<compile_context>
chip_gen: v7x
topology: tpu7x:2x2x1
jax: 0.10.0
libtpu: 0.0.40
codegen_flags: <defaults>
</compile_context>

<pallas_src>
import functools

import jax
import jax.numpy as jnp
from jax.experimental import pallas as pl
from jax.experimental.pallas import tpu as pltpu

NUM_CLASSES = 10
IN_FEATS = 784              # 28 * 28
NUM_CH = 3                  # forced by Linear(300, K) == Linear(3 * 100, K)
CH_IN = NUM_CH * IN_FEATS   # 2352 flattened features per image
H1, H1P = 250, 256          # hidden 1 (real, lane-padded)
H2, H2P = 100, 128          # hidden 2 (real, lane-padded)
KP = 128                    # lane-padded class axis
NEG_INF = -1e30             # bias for padded logit lanes (vanishes in softmax)
LANE = 128

# Lane-aligned per-channel read windows into the flat (B, 2352) input.
# Channel c occupies columns [784c, 784c+784); we read the aligned window
# [CH_START[c], CH_START[c]+CH_WIN) and shift W1 down by CH_SHIFT[c] zero rows
# so the aligned window @ shifted-W1 equals the exact per-channel matmul.
CH_START = tuple((c * IN_FEATS // LANE) * LANE for c in range(NUM_CH))  # (0, 768, 1536)
CH_SHIFT = tuple(c * IN_FEATS - CH_START[c] for c in range(NUM_CH))     # (0, 16, 32)
CH_WIN = CH_SHIFT[-1] + IN_FEATS                                        # 816
assert all(CH_START[c] + CH_WIN <= CH_IN for c in range(NUM_CH))
assert CH_WIN % 8 == 0


def mnist_mlp_kernel(x_ref, w1_ref, b1_ref, w2_ref, b2_ref, w3_ref, b3_ref,
                     out_ref):
    """One batch tile of the whole model.

    x_ref : (TB, 2352)        f32   (flat (c, 28*28) features, natural layout)
    w1_ref: (3, 816, 256)     bf16  (per-channel, row-shifted + zero-padded W1.T)
    b1_ref: (1, 256)          f32
    w2_ref: (256, 128)        bf16  (W2.T, zero-padded)
    b2_ref: (1, 128)          f32
    w3_ref: (3, 128, 128)     bf16  (per-channel W3 chunk, transposed + padded)
    b3_ref: (1, 128)          f32   (real classes = b3, padded lanes = -1e30)
    out_ref: (TB, 128)        f32   (padded log-probs; wrapper slices [:, :K])
    """
    tb = x_ref.shape[0]
    b1 = b1_ref[...]
    b2 = b2_ref[...]

    acc = jnp.zeros((tb, KP), dtype=jnp.float32)
    for c in range(NUM_CH):                      # static unroll over 3 channels
        # Lane-aligned window; bf16 cast happens here (x arrives as f32).
        xc = x_ref[:, CH_START[c]:CH_START[c] + CH_WIN].astype(jnp.bfloat16)
        h1 = jnp.dot(xc, w1_ref[c],
                     preferred_element_type=jnp.float32) + b1
        h1 = jnp.maximum(h1, 0.0).astype(jnp.bfloat16)         # (TB, 256)
        h2 = jnp.dot(h1, w2_ref[...],
                     preferred_element_type=jnp.float32) + b2
        h2 = jnp.maximum(h2, 0.0).astype(jnp.bfloat16)         # (TB, 128)
        acc = acc + jnp.dot(h2, w3_ref[c],
                            preferred_element_type=jnp.float32)

    logits = acc + b3_ref[...]                                 # (TB, 128)

    # Numerically stable log_softmax over the lane-dense (padded) class axis.
    # Padded lanes carry a -1e30 bias, so exp() underflows to 0 and the
    # normalization only sees the real classes.
    m = jnp.max(logits, axis=-1, keepdims=True)
    shifted = logits - m
    lse = jnp.log(jnp.sum(jnp.exp(shifted), axis=-1, keepdims=True))
    out_ref[...] = shifted - lse


def prepare_params(params):
    """One-time weight prep: transpose, pad, channel-shift, cast to bf16."""
    # Layer 1: W1.T padded to 256 cols, then placed at row offset CH_SHIFT[c]
    # inside a (816, 256) slab for each channel (rows outside the placement
    # are zero, so the extra aligned-window columns contribute nothing).
    w1t = jnp.zeros((IN_FEATS, H1P), jnp.float32).at[:, :H1].set(params["w1"].T)
    w1s = jnp.zeros((NUM_CH, CH_WIN, H1P), jnp.float32)
    for c in range(NUM_CH):
        w1s = w1s.at[c, CH_SHIFT[c]:CH_SHIFT[c] + IN_FEATS, :].set(w1t)

    # Layer 2.
    w2p = jnp.zeros((H1P, H2P), jnp.float32).at[:H1, :H2].set(params["w2"].T)

    # Layer 3: (K, 300) -> (K, 3, 100) -> (3, 100, K) -> padded (3, 128, 128).
    w3r = jnp.transpose(params["w3"].reshape(NUM_CLASSES, NUM_CH, H2), (1, 2, 0))
    w3s = (jnp.zeros((NUM_CH, H2P, KP), jnp.float32)
           .at[:, :H2, :NUM_CLASSES].set(w3r))

    b1p = jnp.zeros((1, H1P), jnp.float32).at[0, :H1].set(params["b1"])
    b2p = jnp.zeros((1, H2P), jnp.float32).at[0, :H2].set(params["b2"])
    b3p = (jnp.full((1, KP), NEG_INF, jnp.float32)
           .at[0, :NUM_CLASSES].set(params["b3"]))

    return {"w1": w1s.astype(jnp.bfloat16), "b1": b1p,
            "w2": w2p.astype(jnp.bfloat16), "b2": b2p,
            "w3": w3s.astype(jnp.bfloat16), "b3": b3p}


@functools.partial(jax.jit, static_argnames=("block_b",))
def mnist_mlp_forward(x, prepared, *, block_b=1024):
    """x: (B, 3, 28, 28) float32 (NCHW, like the PyTorch module).

    block_b: batch tile size (multiple of 8).  At 1024 the kernel uses
    ~24 MiB of VMEM (2 x 10 MiB f32 x blocks + 2 x 0.5 MiB out + ~2 MiB
    resident weights), inside the 48 MiB limit on v5e/v6e/v7x.  On v6e
    (128 MiB VMEM) block_b=2048 is a good choice; keep <=1024 on v7x/v5e.
    """
    b, c, h, w = x.shape
    assert c == NUM_CH and h * w == IN_FEATS
    assert block_b % 8 == 0

    # flatten(start_dim=1) is a free, contiguous reshape; x stays f32 — the
    # bf16 cast for the MXU happens inside the kernel on the VMEM tile.
    xf = x.reshape(b, CH_IN)

    # If the whole batch fits one block, use the full batch (any size is a
    # legal block when it equals the array dim); otherwise tile by block_b
    # and let Pallas handle the partial last block (rows beyond B are never
    # written back, and garbage rows only affect themselves).
    tb = min(block_b, b)

    out = pl.pallas_call(
        mnist_mlp_kernel,
        out_shape=jax.ShapeDtypeStruct((b, KP), jnp.float32),
        grid=(pl.cdiv(b, tb),),
        in_specs=[
            pl.BlockSpec((tb, CH_IN), lambda i: (i, 0)),
            pl.BlockSpec((NUM_CH, CH_WIN, H1P), lambda i: (0, 0, 0)),  # resident
            pl.BlockSpec((1, H1P), lambda i: (0, 0)),
            pl.BlockSpec((H1P, H2P), lambda i: (0, 0)),
            pl.BlockSpec((1, H2P), lambda i: (0, 0)),
            pl.BlockSpec((NUM_CH, H2P, KP), lambda i: (0, 0, 0)),
            pl.BlockSpec((1, KP), lambda i: (0, 0)),
        ],
        out_specs=pl.BlockSpec((tb, KP), lambda i: (i, 0)),
        compiler_params=pltpu.CompilerParams(
            dimension_semantics=("parallel",),
            vmem_limit_bytes=48 * 1024 * 1024,
        ),
    )(xf, prepared["w1"], prepared["b1"], prepared["w2"], prepared["b2"],
      prepared["w3"], prepared["b3"])

    # Drop the padded class lanes.
    return out[:, :NUM_CLASSES]


def init_params(key):
    """Deterministic init mimicking nn.Linear default U(-1/sqrt(fan_in), +)."""
    ks = jax.random.split(key, 6)

    def linear(kw, kb, fan_in, fan_out):
        bound = 1.0 / jnp.sqrt(fan_in)
        wgt = jax.random.uniform(kw, (fan_out, fan_in), jnp.float32,
                                 minval=-bound, maxval=bound)
        bias = jax.random.uniform(kb, (fan_out,), jnp.float32,
                                  minval=-bound, maxval=bound)
        return wgt, bias

    w1, b1 = linear(ks[0], ks[1], IN_FEATS, H1)
    w2, b2 = linear(ks[2], ks[3], H1, H2)
    w3, b3 = linear(ks[4], ks[5], NUM_CH * H2, NUM_CLASSES)
    return {"w1": w1, "b1": b1, "w2": w2, "b2": b2, "w3": w3, "b3": b3}


def reference_forward(x, p):
    """Pure-JAX f32 reference mirroring the PyTorch forward exactly."""
    b = x.shape[0]
    h = x.reshape(b, NUM_CH, -1)                                  # (B, 3, 784)
    h = jax.nn.relu(jnp.einsum("bcf,of->bco", h, p["w1"]) + p["b1"])
    h = jax.nn.relu(jnp.einsum("bcf,of->bco", h, p["w2"]) + p["b2"])
    h = h.reshape(b, -1)                                          # (B, 300)
    logits = h @ p["w3"].T + p["b3"]
    return jax.nn.log_softmax(logits, axis=1)


if __name__ == "__main__":
    key = jax.random.PRNGKey(0)
    k_x, k_p = jax.random.split(key)
    params = init_params(k_p)
    prepared = prepare_params(params)     # one-time weight prep, reused below

    # Small primary test (module implies 3 channels of 28x28).
    batch = 2
    x = jax.random.normal(k_x, (batch, NUM_CH, 28, 28), dtype=jnp.float32)
    out = jax.block_until_ready(mnist_mlp_forward(x, prepared))
    ref = reference_forward(x, params)
    assert out.shape == (batch, NUM_CLASSES)
    # bf16 matmul operands (f32 accumulation) -> small deviation vs f32 ref.
    assert jnp.allclose(out, ref, atol=2e-2, rtol=2e-2), (
        f"max abs err = {jnp.max(jnp.abs(out - ref))}")

    # Secondary test exercising multiple grid steps + a partial last block.
    x2 = jax.random.normal(jax.random.PRNGKey(1), (200, NUM_CH, 28, 28),
                           dtype=jnp.float32)
    out2 = jax.block_until_ready(mnist_mlp_forward(x2, prepared, block_b=64))
    ref2 = reference_forward(x2, params)
    assert out2.shape == (200, NUM_CLASSES)
    assert jnp.allclose(out2, ref2, atol=2e-2, rtol=2e-2), (
        f"max abs err = {jnp.max(jnp.abs(out2 - ref2))}")

    print("KERNEL_OK")
</pallas_src>

<mosaic_0001>
module attributes {stable_mosaic.version = 11 : i64} {
  func.func @mnist_mlp_kernel(%arg0: i32, %arg1: memref<2x2352xf32, #tpu.memory_space<vmem>>, %arg2: memref<3x816x256xbf16, #tpu.memory_space<vmem>>, %arg3: memref<1x256xf32, #tpu.memory_space<vmem>>, %arg4: memref<256x128xbf16, #tpu.memory_space<vmem>>, %arg5: memref<1x128xf32, #tpu.memory_space<vmem>>, %arg6: memref<3x128x128xbf16, #tpu.memory_space<vmem>>, %arg7: memref<1x128xf32, #tpu.memory_space<vmem>>, %arg8: memref<2x128xf32, #tpu.memory_space<vmem>>) attributes {dimension_semantics = [#tpu.dimension_semantics<parallel>], iteration_bounds = array<i64: 1>, scalar_prefetch = 0 : i64, scratch_operands = 0 : i64, tpu.core_type = #tpu.core_type<tc>, window_params = [{transform_indices = @transform_0, window_bounds = array<i64: 2, 2352>}, {pipeline_mode = #tpu.pipeline_mode<synchronous>, transform_indices = @transform_1, window_bounds = array<i64: 3, 816, 256>}, {pipeline_mode = #tpu.pipeline_mode<synchronous>, transform_indices = @transform_2, window_bounds = array<i64: 1, 256>}, {pipeline_mode = #tpu.pipeline_mode<synchronous>, transform_indices = @transform_3, window_bounds = array<i64: 256, 128>}, {pipeline_mode = #tpu.pipeline_mode<synchronous>, transform_indices = @transform_4, window_bounds = array<i64: 1, 128>}, {pipeline_mode = #tpu.pipeline_mode<synchronous>, transform_indices = @transform_5, window_bounds = array<i64: 3, 128, 128>}, {pipeline_mode = #tpu.pipeline_mode<synchronous>, transform_indices = @transform_6, window_bounds = array<i64: 1, 128>}, {transform_indices = @transform_7, window_bounds = array<i64: 2, 128>}]} {
    %c0 = arith.constant 0 : index
    %c0_0 = arith.constant 0 : index
    %0 = vector.load %arg3[%c0, %c0_0] : memref<1x256xf32, #tpu.memory_space<vmem>>, vector<1x256xf32>
    %c0_1 = arith.constant 0 : index
    %c0_2 = arith.constant 0 : index
    %1 = vector.load %arg5[%c0_1, %c0_2] : memref<1x128xf32, #tpu.memory_space<vmem>>, vector<1x128xf32>
    %cst = arith.constant 0.000000e+00 : f32
    %2 = vector.broadcast %cst : f32 to vector<2x128xf32>
    %c0_3 = arith.constant 0 : index
    %c0_4 = arith.constant 0 : index
    %3 = vector.load %arg1[%c0_3, %c0_4] : memref<2x2352xf32, #tpu.memory_space<vmem>>, vector<2x816xf32>
    %4 = arith.truncf %3 : vector<2x816xf32> to vector<2x816xbf16>
    %c0_5 = arith.constant 0 : index
    %c0_6 = arith.constant 0 : index
    %c0_7 = arith.constant 0 : index
    %5 = vector.load %arg2[%c0_5, %c0_6, %c0_7] : memref<3x816x256xbf16, #tpu.memory_space<vmem>>, vector<1x816x256xbf16>
    %6 = vector.shape_cast %5 : vector<1x816x256xbf16> to vector<816x256xbf16>
    %cst_8 = arith.constant dense<0.000000e+00> : vector<2x256xf32>
    %7 = tpu.matmul %4, %6, %cst_8 {dimension_numbers = #tpu.dot_dimension_numbers<[1], [0], [0], [1], [0, 0, 1, 1], [], []>} : vector<2x816xbf16>, vector<816x256xbf16>, vector<2x256xf32> -> vector<2x256xf32>
    %8 = vector.broadcast %0 : vector<1x256xf32> to vector<2x256xf32>
    %9 = arith.addf %7, %8 : vector<2x256xf32>
    %cst_9 = arith.constant 0.000000e+00 : f32
    %10 = vector.broadcast %cst_9 : f32 to vector<2x256xf32>
    %11 = arith.maximumf %9, %10 : vector<2x256xf32>
    %12 = arith.truncf %11 : vector<2x256xf32> to vector<2x256xbf16>
    %c0_10 = arith.constant 0 : index
    %c0_11 = arith.constant 0 : index
    %13 = vector.load %arg4[%c0_10, %c0_11] : memref<256x128xbf16, #tpu.memory_space<vmem>>, vector<256x128xbf16>
    %cst_12 = arith.constant dense<0.000000e+00> : vector<2x128xf32>
    %14 = tpu.matmul %12, %13, %cst_12 {dimension_numbers = #tpu.dot_dimension_numbers<[1], [0], [0], [1], [0, 0, 1, 1], [], []>} : vector<2x256xbf16>, vector<256x128xbf16>, vector<2x128xf32> -> vector<2x128xf32>
    %15 = vector.broadcast %1 : vector<1x128xf32> to vector<2x128xf32>
    %16 = arith.addf %14, %15 : vector<2x128xf32>
    %cst_13 = arith.constant 0.000000e+00 : f32
    %17 = vector.broadcast %cst_13 : f32 to vector<2x128xf32>
    %18 = arith.maximumf %16, %17 : vector<2x128xf32>
    %19 = arith.truncf %18 : vector<2x128xf32> to vector<2x128xbf16>
    %c0_14 = arith.constant 0 : index
    %c0_15 = arith.constant 0 : index
    %c0_16 = arith.constant 0 : index
    %20 = vector.load %arg6[%c0_14, %c0_15, %c0_16] : memref<3x128x128xbf16, #tpu.memory_space<vmem>>, vector<1x128x128xbf16>
    %21 = vector.shape_cast %20 : vector<1x128x128xbf16> to vector<128x128xbf16>
    %cst_17 = arith.constant dense<0.000000e+00> : vector<2x128xf32>
    %22 = tpu.matmul %19, %21, %cst_17 {dimension_numbers = #tpu.dot_dimension_numbers<[1], [0], [0], [1], [0, 0, 1, 1], [], []>} : vector<2x128xbf16>, vector<128x128xbf16>, vector<2x128xf32> -> vector<2x128xf32>
    %23 = arith.addf %2, %22 : vector<2x128xf32>
    %c0_18 = arith.constant 0 : index
    %c768 = arith.constant 768 : index
    %24 = vector.load %arg1[%c0_18, %c768] : memref<2x2352xf32, #tpu.memory_space<vmem>>, vector<2x816xf32>
    %25 = arith.truncf %24 : vector<2x816xf32> to vector<2x816xbf16>
    %c1 = arith.constant 1 : index
    %c0_19 = arith.constant 0 : index
    %c0_20 = arith.constant 0 : index
    %26 = vector.load %arg2[%c1, %c0_19, %c0_20] : memref<3x816x256xbf16, #tpu.memory_space<vmem>>, vector<1x816x256xbf16>
    %27 = vector.shape_cast %26 : vector<1x816x256xbf16> to vector<816x256xbf16>
    %cst_21 = arith.constant dense<0.000000e+00> : vector<2x256xf32>
    %28 = tpu.matmul %25, %27, %cst_21 {dimension_numbers = #tpu.dot_dimension_numbers<[1], [0], [0], [1], [0, 0, 1, 1], [], []>} : vector<2x816xbf16>, vector<816x256xbf16>, vector<2x256xf32> -> vector<2x256xf32>
    %29 = vector.broadcast %0 : vector<1x256xf32> to vector<2x256xf32>
    %30 = arith.addf %28, %29 : vector<2x256xf32>
    %cst_22 = arith.constant 0.000000e+00 : f32
    %31 = vector.broadcast %cst_22 : f32 to vector<2x256xf32>
    %32 = arith.maximumf %30, %31 : vector<2x256xf32>
    %33 = arith.truncf %32 : vector<2x256xf32> to vector<2x256xbf16>
    %c0_23 = arith.constant 0 : index
    %c0_24 = arith.constant 0 : index
    %34 = vector.load %arg4[%c0_23, %c0_24] : memref<256x128xbf16, #tpu.memory_space<vmem>>, vector<256x128xbf16>
    %cst_25 = arith.constant dense<0.000000e+00> : vector<2x128xf32>
    %35 = tpu.matmul %33, %34, %cst_25 {dimension_numbers = #tpu.dot_dimension_numbers<[1], [0], [0], [1], [0, 0, 1, 1], [], []>} : vector<2x256xbf16>, vector<256x128xbf16>, vector<2x128xf32> -> vector<2x128xf32>
    %36 = vector.broadcast %1 : vector<1x128xf32> to vector<2x128xf32>
    %37 = arith.addf %35, %36 : vector<2x128xf32>
    %cst_26 = arith.constant 0.000000e+00 : f32
    %38 = vector.broadcast %cst_26 : f32 to vector<2x128xf32>
    %39 = arith.maximumf %37, %38 : vector<2x128xf32>
    %40 = arith.truncf %39 : vector<2x128xf32> to vector<2x128xbf16>
    %c1_27 = arith.constant 1 : index
    %c0_28 = arith.constant 0 : index
    %c0_29 = arith.constant 0 : index
    %41 = vector.load %arg6[%c1_27, %c0_28, %c0_29] : memref<3x128x128xbf16, #tpu.memory_space<vmem>>, vector<1x128x128xbf16>
    %42 = vector.shape_cast %41 : vector<1x128x128xbf16> to vector<128x128xbf16>
    %cst_30 = arith.constant dense<0.000000e+00> : vector<2x128xf32>
    %43 = tpu.matmul %40, %42, %cst_30 {dimension_numbers = #tpu.dot_dimension_numbers<[1], [0], [0], [1], [0, 0, 1, 1], [], []>} : vector<2x128xbf16>, vector<128x128xbf16>, vector<2x128xf32> -> vector<2x128xf32>
    %44 = arith.addf %23, %43 : vector<2x128xf32>
    %c0_31 = arith.constant 0 : index
    %c1536 = arith.constant 1536 : index
    %45 = vector.load %arg1[%c0_31, %c1536] : memref<2x2352xf32, #tpu.memory_space<vmem>>, vector<2x816xf32>
    %46 = arith.truncf %45 : vector<2x816xf32> to vector<2x816xbf16>
    %c2 = arith.constant 2 : index
    %c0_32 = arith.constant 0 : index
    %c0_33 = arith.constant 0 : index
    %47 = vector.load %arg2[%c2, %c0_32, %c0_33] : memref<3x816x256xbf16, #tpu.memory_space<vmem>>, vector<1x816x256xbf16>
    %48 = vector.shape_cast %47 : vector<1x816x256xbf16> to vector<816x256xbf16>
    %cst_34 = arith.constant dense<0.000000e+00> : vector<2x256xf32>
    %49 = tpu.matmul %46, %48, %cst_34 {dimension_numbers = #tpu.dot_dimension_numbers<[1], [0], [0], [1], [0, 0, 1, 1], [], []>} : vector<2x816xbf16>, vector<816x256xbf16>, vector<2x256xf32> -> vector<2x256xf32>
    %50 = vector.broadcast %0 : vector<1x256xf32> to vector<2x256xf32>
    %51 = arith.addf %49, %50 : vector<2x256xf32>
    %cst_35 = arith.constant 0.000000e+00 : f32
    %52 = vector.broadcast %cst_35 : f32 to vector<2x256xf32>
    %53 = arith.maximumf %51, %52 : vector<2x256xf32>
    %54 = arith.truncf %53 : vector<2x256xf32> to vector<2x256xbf16>
    %c0_36 = arith.constant 0 : index
    %c0_37 = arith.constant 0 : index
    %55 = vector.load %arg4[%c0_36, %c0_37] : memref<256x128xbf16, #tpu.memory_space<vmem>>, vector<256x128xbf16>
    %cst_38 = arith.constant dense<0.000000e+00> : vector<2x128xf32>
    %56 = tpu.matmul %54, %55, %cst_38 {dimension_numbers = #tpu.dot_dimension_numbers<[1], [0], [0], [1], [0, 0, 1, 1], [], []>} : vector<2x256xbf16>, vector<256x128xbf16>, vector<2x128xf32> -> vector<2x128xf32>
    %57 = vector.broadcast %1 : vector<1x128xf32> to vector<2x128xf32>
    %58 = arith.addf %56, %57 : vector<2x128xf32>
    %cst_39 = arith.constant 0.000000e+00 : f32
    %59 = vector.broadcast %cst_39 : f32 to vector<2x128xf32>
    %60 = arith.maximumf %58, %59 : vector<2x128xf32>
    %61 = arith.truncf %60 : vector<2x128xf32> to vector<2x128xbf16>
    %c2_40 = arith.constant 2 : index
    %c0_41 = arith.constant 0 : index
    %c0_42 = arith.constant 0 : index
    %62 = vector.load %arg6[%c2_40, %c0_41, %c0_42] : memref<3x128x128xbf16, #tpu.memory_space<vmem>>, vector<1x128x128xbf16>
    %63 = vector.shape_cast %62 : vector<1x128x128xbf16> to vector<128x128xbf16>
    %cst_43 = arith.constant dense<0.000000e+00> : vector<2x128xf32>
    %64 = tpu.matmul %61, %63, %cst_43 {dimension_numbers = #tpu.dot_dimension_numbers<[1], [0], [0], [1], [0, 0, 1, 1], [], []>} : vector<2x128xbf16>, vector<128x128xbf16>, vector<2x128xf32> -> vector<2x128xf32>
    %65 = arith.addf %44, %64 : vector<2x128xf32>
    %c0_44 = arith.constant 0 : index
    %c0_45 = arith.constant 0 : index
    %66 = vector.load %arg7[%c0_44, %c0_45] : memref<1x128xf32, #tpu.memory_space<vmem>>, vector<1x128xf32>
    %67 = vector.broadcast %66 : vector<1x128xf32> to vector<2x128xf32>
    %68 = arith.addf %65, %67 : vector<2x128xf32>
    %cst_46 = arith.constant dense<0xFF800000> : vector<2xf32>
    %69 = vector.multi_reduction <maximumf>, %68, %cst_46 [1] : vector<2x128xf32> to vector<2xf32>
    %70 = vector.shape_cast %69 : vector<2xf32> to vector<2x1xf32>
    %71 = vector.broadcast %70 : vector<2x1xf32> to vector<2x128xf32>
    %72 = arith.subf %68, %71 : vector<2x128xf32>
    %73 = math.exp %72 : vector<2x128xf32>
    %cst_47 = arith.constant dense<0.000000e+00> : vector<2xf32>
    %74 = vector.multi_reduction <add>, %73, %cst_47 [1] : vector<2x128xf32> to vector<2xf32>
    %75 = vector.shape_cast %74 : vector<2xf32> to vector<2x1xf32>
    %76 = math.log %75 : vector<2x1xf32>
    %77 = vector.broadcast %76 : vector<2x1xf32> to vector<2x128xf32>
    %78 = arith.subf %72, %77 : vector<2x128xf32>
    %c0_48 = arith.constant 0 : index
    %c0_49 = arith.constant 0 : index
    %79 = vector.load %arg8[%c0_48, %c0_49] : memref<2x128xf32, #tpu.memory_space<vmem>>, vector<2x128xf32>
    tpu.vector_store %arg8[%c0_48, %c0_49], %78 {strides = array<i32>} : memref<2x128xf32, #tpu.memory_space<vmem>>, vector<2x128xf32>,
    return
  }
  func.func @transform_0(%arg0: i32) -> (i32, i32) {
    %c0_i32 = arith.constant 0 : i32
    %c0_i32_0 = arith.constant 0 : i32
    return %arg0, %c0_i32 : i32, i32
  }
  func.func @transform_1(%arg0: i32) -> (i32, i32, i32) {
    %c0_i32 = arith.constant 0 : i32
    %c0_i32_0 = arith.constant 0 : i32
    %c0_i32_1 = arith.constant 0 : i32
    %c0_i32_2 = arith.constant 0 : i32
    return %c0_i32, %c0_i32_0, %c0_i32_1 : i32, i32, i32
  }
  func.func @transform_2(%arg0: i32) -> (i32, i32) {
    %c0_i32 = arith.constant 0 : i32
    %c0_i32_0 = arith.constant 0 : i32
    %c0_i32_1 = arith.constant 0 : i32
    return %c0_i32, %c0_i32_0 : i32, i32
  }
  func.func @transform_3(%arg0: i32) -> (i32, i32) {
    %c0_i32 = arith.constant 0 : i32
    %c0_i32_0 = arith.constant 0 : i32
    %c0_i32_1 = arith.constant 0 : i32
    return %c0_i32, %c0_i32_0 : i32, i32
  }
  func.func @transform_4(%arg0: i32) -> (i32, i32) {
    %c0_i32 = arith.constant 0 : i32
    %c0_i32_0 = arith.constant 0 : i32
    %c0_i32_1 = arith.constant 0 : i32
    return %c0_i32, %c0_i32_0 : i32, i32
  }
  func.func @transform_5(%arg0: i32) -> (i32, i32, i32) {
    %c0_i32 = arith.constant 0 : i32
    %c0_i32_0 = arith.constant 0 : i32
    %c0_i32_1 = arith.constant 0 : i32
    %c0_i32_2 = arith.constant 0 : i32
    return %c0_i32, %c0_i32_0, %c0_i32_1 : i32, i32, i32
  }
  func.func @transform_6(%arg0: i32) -> (i32, i32) {
    %c0_i32 = arith.constant 0 : i32
    %c0_i32_0 = arith.constant 0 : i32
    %c0_i32_1 = arith.constant 0 : i32
    return %c0_i32, %c0_i32_0 : i32, i32
  }
  func.func @transform_7(%arg0: i32) -> (i32, i32) {
    %c0_i32 = arith.constant 0 : i32
    %c0_i32_0 = arith.constant 0 : i32
    return %arg0, %c0_i32 : i32, i32
  }
}

</mosaic_0001>

<bundles_post_ra>
// kernel: mnist_mlp_forward.1
= control target key start
LH: loop header
LB: loop body
LE: loop exit
PB: predicated region body
PF: predicated region fallthrough
CT: control target
= control target key end

     0   :  { %12 = vsyncpa [#allocation3], 0  ;;  %s4846_s0 = inlined_call_operand.vmem [shape: f32[2,2352], index: 0, kind: input, shape index: {}]   ;;  %s4847_s1 = inlined_call_operand.hbm [shape: bf16[3,816,256], index: 1, kind: input, shape index: {}]   ;;  %s4848_s2 = inlined_call_operand.hbm [shape: f32[1,256], index: 2, kind: input, shape index: {}]   ;;  %s4849_s3 = inlined_call_operand.hbm [shape: bf16[256,128], index: 3, kind: input, shape index: {}]   ;;  %s4850_s4 = inlined_call_operand.hbm [shape: f32[1,128], index: 4, kind: input, shape index: {}]   ;;  %s4851_s5 = inlined_call_operand.hbm [shape: bf16[3,128,128], index: 5, kind: input, shape index: {}]   ;;  %s4852_s6 = inlined_call_operand.hbm [shape: f32[1,128], index: 6, kind: input, shape index: {}]   ;;  %s4853_s7 = inlined_call_operand.hbm [shape: f32[2,128], index: 7, kind: output, shape index: {}]  }
   0x1   :  { %13 = vsyncpa [#allocation6], 0 }
   0x2   :  { %14 = vsyncpa [#allocation9], 0 }
   0x3   :  { %15 = vsyncpa [#allocation12], 0 }
   0x4   :  { %16 = vsyncpa [#allocation4], 0  ;;  %s4479_s24 = smov [#allocation5]   ;;  %s4480_s26 = smov [#allocation8]  }
   0x5   :  { %s37_s25 = sshll.u32 %s4479_s24, 4  ;;  %s59_s27 = sshll.u32 %s4480_s26, 4  ;;  %s38_s25 = int_to_ptr.vmem [resolvable:$true] %s37_s25  ;;  %s60_s27 = int_to_ptr.vmem [resolvable:$true] %s59_s27 }
   0x6   :  { %s4315_s30 = scalar_lea.hbm %s4848_s2, 32 }
   0x7   :  { %p4316_p0 = scmp.ne.s32.totalorder %s4848_s2, %s4315_s30  ;;  %p4319_p1 = scmp.lt.u32.totalorder %s4315_s30, %s4848_s2 }
   0x9   :  { %p4321_p2 = pnand %p4319_p1, %p4316_p0 }
   0xb   :  { %4324 = shalt.err (!%p4321_p2)
}
   0xc   :  { %s4325_s12 = scalar_lea.vmem %s38_s25, 32  ;;  %p4330_p4 = scmp.lt.s32.totalorder %s38_s25, %s38_s25 }
   0xd   :  { %p4326_p3 = scmp.ne.s32.totalorder %s38_s25, %s4325_s12  ;;  %p4331_p5 = scmp.lt.s32.totalorder %s4325_s12, %s4325_s12 }
   0xf   :  { %p4332_p6 = por %p4331_p5, %p4330_p4 }
  0x11   :  { %p4333_p7 = pnand %p4332_p6, %p4326_p3 }
  0x13   :  { %4336 = shalt.err (!%p4333_p7)
}
  0x14   :  { %40 = dma.hbm_to_vmem [thread:$0]  %s4848_s2, 32, %s38_s25, [#allocation6]  }
  0x15   :  { %s4337_s17 = scalar_lea.hbm %s4850_s4, 16 }
  0x16   :  { %p4338_p8 = scmp.ne.s32.totalorder %s4850_s4, %s4337_s17  ;;  %p4341_p9 = scmp.lt.u32.totalorder %s4337_s17, %s4850_s4 }
  0x18   :  { %p4343_p10 = pnand %p4341_p9, %p4338_p8 }
  0x1a   :  { %4346 = shalt.err (!%p4343_p10)
}
  0x1b   :  { %s4347_s22 = scalar_lea.vmem %s60_s27, 16  ;;  %s4351_s23 = scalar_lea.vmem %s60_s27, 32 }
  0x1c   :  { %p4348_p11 = scmp.ne.s32.totalorder %s60_s27, %s4347_s22  ;;  %p4352_p12 = scmp.lt.s32.totalorder %s60_s27, %s60_s27 }
  0x1d   :  { %p4353_p13 = scmp.lt.s32.totalorder %s4351_s23, %s4347_s22 }
  0x1f   :  { %p4354_p0 = por %p4353_p13, %p4352_p12 }
  0x21   :  { %p4355_p1 = pnand %p4354_p0, %p4348_p11 }
  0x23   :  { %4358 = shalt.err (!%p4355_p1)
}
  0x24   :  { %62 = dma.hbm_to_vmem [thread:$0]  %s4850_s4, 16, %s60_s27, [#allocation9]  }
  0x25   :  { %s4481_s25 = smov [#allocation2]   ;;  %s4359_s30 = scalar_lea.hbm %s4847_s1, 39168 }
  0x26   :  { %s24_s26 = sshll.u32 %s4481_s25, 4  ;;  %p4360_p2 = scmp.ne.s32.totalorder %s4847_s1, %s4359_s30  ;;  %s25_s26 = int_to_ptr.vmem [resolvable:$true] %s24_s26 }
  0x27   :  { %p4363_p3 = scmp.lt.u32.totalorder %s4359_s30, %s4847_s1 }
  0x29   :  { %p4365_p4 = pnand %p4363_p3, %p4360_p2 }
  0x2b   :  { %4368 = shalt.err (!%p4365_p4)
}
  0x2c   :  { %s4369_s12 = scalar_lea.vmem %s25_s26, 39168  ;;  %p4374_p6 = scmp.lt.s32.totalorder %s25_s26, %s25_s26 }
  0x2d   :  { %p4370_p5 = scmp.ne.s32.totalorder %s25_s26, %s4369_s12  ;;  %p4375_p7 = scmp.lt.s32.totalorder %s4369_s12, %s4369_s12 }
  0x2f   :  { %p4376_p8 = por %p4375_p7, %p4374_p6 }
  0x31   :  { %p4377_p9 = pnand %p4376_p8, %p4370_p5 }
  0x33   :  { %4380 = shalt.err (!%p4377_p9)
}
  0x34   :  { %s4482_s4 = smov 128   ;;  %s4483_s27 = smov 8  }
  0x35   :  { %30 = dma.hbm_to_vmem [thread:$0]  %s4847_s1, 39168, %s25_s26, [#allocation3], %s4482_s4, %s4482_s4, %s4483_s27  }
  0x36   :  { %s4484_s15 = smov [#allocation7]   ;;  %s4381_s19 = scalar_lea.hbm %s4849_s3, 2048 }
  0x37   :  { %s46_s16 = sshll.u32 %s4484_s15, 4  ;;  %p4382_p10 = scmp.ne.s32.totalorder %s4849_s3, %s4381_s19  ;;  %s47_s16 = int_to_ptr.vmem [resolvable:$true] %s46_s16 }
  0x38   :  { %p4385_p11 = scmp.lt.u32.totalorder %s4381_s19, %s4849_s3 }
  0x3a   :  { %p4387_p12 = pnand %p4385_p11, %p4382_p10 }
  0x3c   :  { %4390 = shalt.err (!%p4387_p12)
}
  0x3d   :  { %s4391_s2 = scalar_lea.vmem %s47_s16, 2048  ;;  %p4396_p0 = scmp.lt.s32.totalorder %s47_s16, %s47_s16 }
  0x3e   :  { %p4392_p13 = scmp.ne.s32.totalorder %s47_s16, %s4391_s2  ;;  %p4397_p1 = scmp.lt.s32.totalorder %s4391_s2, %s4391_s2 }
  0x40   :  { %p4398_p2 = por %p4397_p1, %p4396_p0 }
  0x42   :  { %p4399_p3 = pnand %p4398_p2, %p4392_p13 }
  0x44   :  { %4402 = shalt.err (!%p4399_p3)
}
  0x45   :  { %s4485_s1 = smov 64   ;;  %s4486_s24 = smov 4  }
  0x46   :  { %52 = dma.hbm_to_vmem [thread:$0]  %s4849_s3, 2048, %s47_s16, [#allocation6], %s4485_s1, %s4485_s1, %s4486_s24  }
  0x47   :  { %s4487_s28 = smov [#allocation10]   ;;  %s4488_s30 = smov [#allocation11]  }
  0x48   :  { %s68_s29 = sshll.u32 %s4487_s28, 4  ;;  %s81_s8 = sshll.u32 %s4488_s30, 4  ;;  %s69_s29 = int_to_ptr.vmem [resolvable:$true] %s68_s29  ;;  %s82_s8 = int_to_ptr.vmem [resolvable:$true] %s81_s8 }
  0x49   :  { %s4403_s11 = scalar_lea.hbm %s4851_s5, 3072 }
  0x4a   :  { %p4404_p4 = scmp.ne.s32.totalorder %s4851_s5, %s4403_s11  ;;  %p4407_p5 = scmp.lt.u32.totalorder %s4403_s11, %s4851_s5 }
  0x4c   :  { %p4409_p6 = pnand %p4407_p5, %p4404_p4 }
  0x4e   :  { %4412 = shalt.err (!%p4409_p6)
}
  0x4f   :  { %s4413_s3 = scalar_lea.vmem %s69_s29, 3072  ;;  %p4418_p8 = scmp.lt.s32.totalorder %s69_s29, %s69_s29 }
  0x50   :  { %p4414_p7 = scmp.ne.s32.totalorder %s69_s29, %s4413_s3  ;;  %p4419_p9 = scmp.lt.s32.totalorder %s4413_s3, %s4413_s3 }
  0x52   :  { %p4420_p10 = por %p4419_p9, %p4418_p8 }
  0x54   :  { %p4421_p11 = pnand %p4420_p10, %p4414_p7 }
  0x56   :  { %4424 = shalt.err (!%p4421_p11)
}
  0x57   :  { %74 = dma.hbm_to_vmem [thread:$0]  %s4851_s5, 3072, %s69_s29, [#allocation9], %s4485_s1, %s4485_s1, %s4486_s24  }
  0x58   :  { %s4425_s18 = scalar_lea.hbm %s4852_s6, 16 }
  0x59   :  { %p4426_p12 = scmp.ne.s32.totalorder %s4852_s6, %s4425_s18  ;;  %p4429_p13 = scmp.lt.u32.totalorder %s4425_s18, %s4852_s6 }
  0x5b   :  { %p4431_p0 = pnand %p4429_p13, %p4426_p12 }
  0x5d   :  { %4434 = shalt.err (!%p4431_p0)
}
  0x5e   :  { %s4435_s23 = scalar_lea.vmem %s82_s8, 16  ;;  %s4439_s2 = scalar_lea.vmem %s82_s8, 32 }
  0x5f   :  { %p4436_p1 = scmp.ne.s32.totalorder %s82_s8, %s4435_s23  ;;  %p4440_p2 = scmp.lt.s32.totalorder %s82_s8, %s82_s8 }
  0x60   :  { %p4441_p3 = scmp.lt.s32.totalorder %s4439_s2, %s4435_s23 }
  0x62   :  { %p4442_p4 = por %p4441_p3, %p4440_p2 }
  0x64   :  { %p4443_p5 = pnand %p4442_p4, %p4436_p1 }
  0x66   :  { %4446 = shalt.err (!%p4443_p5)
}
  0x67   :  { %84 = dma.hbm_to_vmem [thread:$0]  %s4852_s6, 16, %s82_s8, [#allocation12]  }
  0x68   :  { %4469 = dma.done.wait [#allocation3], 39168  }
  0x69   :  { %4470 = vsyncadd [#allocation3], 4294928128 }
  0x6a   :  { %4471 = dma.done.wait [#allocation6], 2080  }
  0x6b   :  { %4472 = vsyncadd [#allocation6], 4294965216 }
  0x6c   :  { %4473 = dma.done.wait [#allocation9], 3088  }
  0x6d   :  { %4474 = vsyncadd [#allocation9], 4294964208 }
  0x6e   :  { %4475 = dma.done.wait [#allocation12], 16  }
  0x6f   :  { %4476 = vsyncadd [#allocation12], 4294967280  ;;  %v3796_v0 = vld [vmem:[#allocation2 + $0x104] ss:$8 sps:$4 sm:$0xff]   ;;  %v3798_v1 = vld [vmem:[#allocation2 + $0x100] ss:$8 sps:$4 sm:$0xff]   ;;  %v114_v11 = vlaneseq }
  0x70   :  { %825 = vmatprep.subr.bf16.mxu0 %v3796_v0  ;;  %v3799_v2 = vld [vmem:[#allocation2 + $0x114] ss:$8 sps:$4 sm:$0xff]   ;;  %v3801_v3 = vld [vmem:[#allocation2 + $0x110] ss:$8 sps:$4 sm:$0xff]   ;;  %v3802_v4 = vld [vmem:[#allocation2 + $0x124] ss:$8 sps:$4 sm:$0xff]  }
  0x71   :  { %826 = vmatpush1.bf16.msra.mxu0 %v3798_v1  ;;  %v3804_v5 = vld [vmem:[#allocation2 + $0x120] ss:$8 sps:$4 sm:$0xff]   ;;  %v3805_v6 = vld [vmem:[#allocation2 + $0x134] ss:$8 sps:$4 sm:$0xff]   ;;  %v3807_v7 = vld [vmem:[#allocation2 + $0x130] ss:$8 sps:$4 sm:$0xff]  }
  0x72   :  { %827 = vmatprep.subr.bf16.mxu0 %v3799_v2  ;;  %v3808_v8 = vld [vmem:[#allocation2 + $0x144] ss:$8 sps:$4 sm:$0xff]   ;;  %v4489_v9 = vmov 1983009808   ;;  %v3810_v12 = vld [vmem:[#allocation2 + $0x140] ss:$8 sps:$4 sm:$0xff]  }
  0x73   :  { %v112_v10 = vunpack.c.l.s4 %v4489_v9  ;;  %v3811_v13 = vld [vmem:[#allocation2 + $0x154] ss:$8 sps:$4 sm:$0xff]   ;;  %v4606_v15 = vshrl.u32 %v114_v11, 7  ;;  %v3813_v16 = vld [vmem:[#allocation2 + $0x150] ss:$8 sps:$4 sm:$0xff]   ;;  %v106_v19 = vld [vmem:[%s4846_s0] sm:$0xff] }
  0x74   :  { %v3814_v17 = vld [vmem:[#allocation2 + $0x164] ss:$8 sps:$4 sm:$0xff]   ;;  %v110_v20 = vcombine.high %v106_v19, %v106_v19  ;;  %v3816_v22 = vld [vmem:[#allocation2 + $0x160] ss:$8 sps:$4 sm:$0xff]   ;;  %v3817_v23 = vld [vmem:[#allocation2 + $0x174] ss:$8 sps:$4 sm:$0xff]  }
  0x75   :  { %828 = vmatpush1.bf16.msra.mxu0 %v3801_v3  ;;  %v113_v14 = vunpack.c.0.s8 %v112_v10  ;;  %v3851_v26 = vld [vmem:[#allocation2 + $0x4] ss:$8 sps:$4 sm:$0xff]   ;;  %v3853_v27 = vld [vmem:[#allocation2] ss:$8 sps:$4 sm:$0xff]   ;;  %v3819_v28 = vld [vmem:[#allocation2 + $0x170] ss:$8 sps:$4 sm:$0xff]  }
  0x76   :  { %829 = vmatprep.subr.bf16.mxu0 %v3802_v4  ;;  %v3820_v29 = vld [vmem:[#allocation2 + $0x184] ss:$8 sps:$4 sm:$0xff]   ;;  %784 = vmatprep.subr.bf16.mxu1 %v3851_v26  ;;  %v3857_v32 = vld [vmem:[#allocation2 + $0x14] ss:$8 sps:$4 sm:$0xff]   ;;  %v3859_v34 = vld [vmem:[#allocation2 + $0x10] ss:$8 sps:$4 sm:$0xff]  }
  0x77   :  { %v4609_v18 = vsub.s32 %v113_v14, %v4606_v15  ;;  %785 = vmatpush1.bf16.msra.mxu1 %v3853_v27  ;;  %v3822_v35 = vld [vmem:[#allocation2 + $0x180] ss:$8 sps:$4 sm:$0xff]   ;;  %v3863_v36 = vld [vmem:[#allocation2 + $0x24] ss:$8 sps:$4 sm:$0xff]   ;;  %v3823_v37 = vld [vmem:[#allocation2 + $0x194] ss:$8 sps:$4 sm:$0xff]  }
  0x78   :  { %786 = vmatprep.subr.bf16.mxu1 %v3857_v32  ;;  %v3865_v38 = vld [vmem:[#allocation2 + $0x20] ss:$8 sps:$4 sm:$0xff]   ;;  %v3869_v39 = vld [vmem:[#allocation2 + $0x34] ss:$8 sps:$4 sm:$0xff]   ;;  %v3825_v40 = vld [vmem:[#allocation2 + $0x190] ss:$8 sps:$4 sm:$0xff]  }
  0x79   :  { %830 = vmatpush1.bf16.msra.mxu0 %v3804_v5  ;;  %v4615_v21 = vrot.slane %v106_v19, %v4609_v18  ;;  %v4618_v24 = vrot.slane %v110_v20, %v4609_v18  ;;  %v3826_v41 = vld [vmem:[#allocation2 + $0x1a4] ss:$8 sps:$4 sm:$0xff]   ;;  %v3871_v42 = vld [vmem:[#allocation2 + $0x30] ss:$8 sps:$4 sm:$0xff]   ;;  %v3828_v44 = vld [vmem:[#allocation2 + $0x1a0] ss:$8 sps:$4 sm:$0xff]  }
  0x7a   :  { %831 = vmatprep.subr.bf16.mxu0 %v3805_v6  ;;  %v3875_v43 = vld [vmem:[#allocation2 + $0x44] ss:$8 sps:$4 sm:$0xff]   ;;  %v3829_v45 = vld [vmem:[#allocation2 + $0x1b4] ss:$8 sps:$4 sm:$0xff]   ;;  %v3877_v46 = vld [vmem:[#allocation2 + $0x40] ss:$8 sps:$4 sm:$0xff]  }
  0x7b   :  { %v125_v25 = vcombine.high %v4615_v21, %v4615_v21  ;;  %v126_v30 = vcombine.high %v4618_v24, %v4618_v24  ;;  %787 = vmatpush1.bf16.msra.mxu1 %v3859_v34  ;;  %v3881_v47 = vld [vmem:[#allocation2 + $0x54] ss:$8 sps:$4 sm:$0xff]   ;;  %v3831_v48 = vld [vmem:[#allocation2 + $0x1b0] ss:$8 sps:$4 sm:$0xff]   ;;  %v3832_v49 = vld [vmem:[#allocation2 + $0x1c4] ss:$8 sps:$4 sm:$0xff]   ;;  %v152_v4 = vpack.c.bf16 %v4618_v24, %v4618_v24 }
  0x7c   :  { %788 = vmatprep.subr.bf16.mxu1 %v3863_v36  ;;  %v3883_v50 = vld [vmem:[#allocation2 + $0x50] ss:$8 sps:$4 sm:$0xff]   ;;  %v3887_v51 = vld [vmem:[#allocation2 + $0x64] ss:$8 sps:$4 sm:$0xff]   ;;  %v3834_v52 = vld [vmem:[#allocation2 + $0x1c0] ss:$8 sps:$4 sm:$0xff]  }
  0x7d   :  { %832 = vmatpush1.bf16.msra.mxu0 %v3807_v7  ;;  %v151_v31 = vpack.c.bf16 %v125_v25, %v125_v25  ;;  %v153_v33 = vpack.c.bf16 %v126_v30, %v126_v30  ;;  %v3835_v53 = vld [vmem:[#allocation2 + $0x1d4] ss:$8 sps:$4 sm:$0xff]   ;;  %v3889_v54 = vld [vmem:[#allocation2 + $0x60] ss:$8 sps:$4 sm:$0xff]   ;;  %v3837_v56 = vld [vmem:[#allocation2 + $0x1d0] ss:$8 sps:$4 sm:$0xff]  }
  0x7e   :  { %833 = vmatprep.subr.bf16.mxu0 %v3808_v8  ;;  %v3893_v55 = vld [vmem:[#allocation2 + $0x74] ss:$8 sps:$4 sm:$0xff]   ;;  %v3838_v57 = vld [vmem:[#allocation2 + $0x1e4] ss:$8 sps:$4 sm:$0xff]   ;;  %v3895_v58 = vld [vmem:[#allocation2 + $0x70] ss:$8 sps:$4 sm:$0xff]  }
  0x7f   :  { %816 = vmatprep.mubr.bf16.mxu1 %v151_v31  ;;  %857 = vmatprep.mubr.bf16.mxu0 %v153_v33  ;;  %v3899_v59 = vld [vmem:[#allocation2 + $0x84] ss:$8 sps:$4 sm:$0xff]   ;;  %v3840_v60 = vld [vmem:[#allocation2 + $0x1e0] ss:$8 sps:$4 sm:$0xff]   ;;  %v3841_v61 = vld [vmem:[#allocation2 + $0x1f4] ss:$8 sps:$4 sm:$0xff]  }
  0x80   :  { %789 = vmatpush1.bf16.msra.mxu1 %v3865_v38  ;;  %v3901_v62 = vld [vmem:[#allocation2 + $0x80] ss:$8 sps:$4 sm:$0xff]   ;;  %v3905_v63 = vld [vmem:[#allocation2 + $0x94] ss:$8 sps:$4 sm:$0xff]   ;;  %v3843_v0 = vld [vmem:[#allocation2 + $0x1f0] ss:$8 sps:$4 sm:$0xff]  }
  0x81   :  { %834 = vmatpush1.bf16.msra.mxu0 %v3810_v12  ;;  %790 = vmatprep.subr.bf16.mxu1 %v3869_v39  ;;  %v3847_v1 = vld [vmem:[#allocation2 + $0x204] ss:$8 sps:$4 sm:$0xff]   ;;  %v3907_v2 = vld [vmem:[#allocation2 + $0x90] ss:$8 sps:$4 sm:$0xff]   ;;  %v3845_v6 = vld [vmem:[#allocation2 + $0x200] ss:$8 sps:$4 sm:$0xff]   ;;  %v150_v39 = vpack.c.bf16 %v4615_v21, %v4615_v21 }
  0x82   :  { %835 = vmatprep.subr.bf16.mxu0 %v3811_v13  ;;  %v3911_v3 = vld [vmem:[#allocation2 + $0xa4] ss:$8 sps:$4 sm:$0xff]   ;;  %v3850_v8 = vld [vmem:[#allocation2 + $0x214] ss:$8 sps:$4 sm:$0xff]   ;;  %v3913_v9 = vld [vmem:[#allocation2 + $0xa0] ss:$8 sps:$4 sm:$0xff]  }
  0x83   :  { %v4629_v5 = vld [vmem:[%s4846_s0 + $0x8] sm:$0x3f]  ;;  %v3917_v10 = vld [vmem:[#allocation2 + $0xb4] ss:$8 sps:$4 sm:$0xff]   ;;  %v3848_v12 = vld [vmem:[#allocation2 + $0x210] ss:$8 sps:$4 sm:$0xff]  }
  0x84   :  { %791 = vmatpush1.bf16.msra.mxu1 %v3871_v42  ;;  %v4633_v7 = vrot.slane %v4629_v5, %v4609_v18  ;;  %v3856_v14 = vld [vmem:[#allocation2 + $0x224] ss:$8 sps:$4 sm:$0xff]   ;;  %v3854_v19 = vld [vmem:[#allocation2 + $0x220] ss:$8 sps:$4 sm:$0xff]   ;;  %v3862_v20 = vld [vmem:[#allocation2 + $0x234] ss:$8 sps:$4 sm:$0xff]  }
  0x85   :  { %836 = vmatpush1.bf16.msra.mxu0 %v3813_v16  ;;  %792 = vmatprep.subr.bf16.mxu1 %v3875_v43  ;;  %v3919_v16 = vld [vmem:[#allocation2 + $0xb0] ss:$8 sps:$4 sm:$0xff]   ;;  %v3868_v25 = vld [vmem:[#allocation2 + $0x244] ss:$8 sps:$4 sm:$0xff]   ;;  %v3866_v27 = vld [vmem:[#allocation2 + $0x240] ss:$8 sps:$4 sm:$0xff]  }
  0x86   :  { %837 = vmatprep.subr.bf16.mxu0 %v3814_v17  ;;  %v142_v11 = vcombine.high %v4633_v7, %v4633_v7  ;;  %v3923_v17 = vld [vmem:[#allocation2 + $0xc4] ss:$8 sps:$4 sm:$0xff]   ;;  %v3860_v24 = vld [vmem:[#allocation2 + $0x230] ss:$8 sps:$4 sm:$0xff]   ;;  %v3938_v30 = vld [vmem:[#allocation2 + $0xe0] ss:$8 sps:$4 sm:$0xff]  }
  0x87   :  { %v3931_v26 = vld [vmem:[#allocation2 + $0xd0] ss:$8 sps:$4 sm:$0xff]   ;;  %v3942_v31 = vld [vmem:[#allocation2 + $0xf4] ss:$8 sps:$4 sm:$0xff]   ;;  %v3880_v33 = vld [vmem:[#allocation2 + $0x264] ss:$8 sps:$4 sm:$0xff]  }
  0x88   :  { %793 = vmatpush1.bf16.msra.mxu1 %v3877_v46  ;;  %v155_v13 = vpack.c.bf16 %v142_v11, %v142_v11  ;;  %v3872_v32 = vld [vmem:[#allocation2 + $0x250] ss:$8 sps:$4 sm:$0xff]   ;;  %v3878_v36 = vld [vmem:[#allocation2 + $0x260] ss:$8 sps:$4 sm:$0xff]   ;;  %v3892_v42 = vld [vmem:[#allocation2 + $0x284] ss:$8 sps:$4 sm:$0xff]  }
  0x89   :  { %838 = vmatpush1.bf16.msra.mxu0 %v3816_v22  ;;  %794 = vmatprep.subr.bf16.mxu1 %v3881_v47  ;;  %v3925_v22 = vld [vmem:[#allocation2 + $0xc0] ss:$8 sps:$4 sm:$0xff]   ;;  %v3944_v34 = vld [vmem:[#allocation2 + $0xf0] ss:$8 sps:$4 sm:$0xff]   ;;  %v3898_v21 = vld [vmem:[#allocation2 + $0x294] ss:$8 sps:$4 sm:$0xff]  }
  0x8a   :  { %839 = vmatprep.subr.bf16.mxu0 %v3817_v23  ;;  %v3929_v23 = vld [vmem:[#allocation2 + $0xd4] ss:$8 sps:$4 sm:$0xff]   ;;  %v4652_v46 = vld [vmem:[#allocation7 + $0x10] sm:$0xff]   ;;  %v4654_v47 = vld [vmem:[#allocation7 + $0x58] sm:$0xff]   ;;  %vm780_vm0 = vcmask 392192   ;;  %vm4492_vm1 = vmmov 0  }
  0x8b   :  { %v4639_v38 = vld [vmem:[#allocation7] sm:$0xff]   ;;  %v4646_v43 = vld [vmem:[#allocation7 + $0x8] sm:$0xff]   ;;  %vm3205_vm2 = vcmask 1041408  }
  0x8c   :  { %795 = vmatpush1.bf16.msra.mxu1 %v3883_v50  ;;  %v3958_v50 = vld [vmem:[#allocation7 + $0x18] sm:$0xff]  }
  0x8d   :  { %840 = vmatpush1.bf16.msra.mxu0 %v3819_v28  ;;  %796 = vmatprep.subr.bf16.mxu1 %v3887_v51  ;;  %v3935_v28 = vld [vmem:[#allocation2 + $0xe4] ss:$8 sps:$4 sm:$0xff]   ;;  %v3959_v51 = vld [vmem:[#allocation7 + $0x60] sm:$0xff]  }
  0x8e   :  { %841 = vmatprep.subr.bf16.mxu0 %v3820_v29  ;;  %v3874_v29 = vld [vmem:[#allocation2 + $0x254] ss:$8 sps:$4 sm:$0xff]  }
  0x90   :  { %797 = vmatpush1.bf16.msra.mxu1 %v3889_v54  ;;  %v3960_v54 = vld [vmem:[#allocation7 + $0x20] sm:$0xff]  }
  0x91   :  { %842 = vmatpush1.bf16.msra.mxu0 %v3822_v35  ;;  %798 = vmatprep.subr.bf16.mxu1 %v3893_v55  ;;  %v4637_v35 = vld [vmem:[#allocation7 + $0x40] sm:$0xff]  }
  0x92   :  { %843 = vmatprep.subr.bf16.mxu0 %v3823_v37  ;;  %v3886_v37 = vld [vmem:[#allocation2 + $0x274] ss:$8 sps:$4 sm:$0xff]   ;;  %v3908_v55 = vld [vmem:[#allocation2 + $0x2b0] ss:$8 sps:$4 sm:$0xff]  }
  0x94   :  { %799 = vmatpush1.bf16.msra.mxu1 %v3895_v58  ;;  %v3922_v58 = vld [vmem:[#allocation2 + $0x2d4] ss:$8 sps:$4 sm:$0xff]  }
  0x95   :  { %844 = vmatpush1.bf16.msra.mxu0 %v3825_v40  ;;  %800 = vmatprep.subr.bf16.mxu1 %v3899_v59  ;;  %v4643_v40 = vld [vmem:[#allocation7 + $0x48] sm:$0xff]  }
  0x96   :  { %845 = vmatprep.subr.bf16.mxu0 %v3826_v41  ;;  %v3884_v41 = vld [vmem:[#allocation2 + $0x270] ss:$8 sps:$4 sm:$0xff]  }
  0x97   :  { %v3920_v59 = vld [vmem:[#allocation2 + $0x2d0] ss:$8 sps:$4 sm:$0xff]  }
  0x98   :  { %801 = vmatpush1.bf16.msra.mxu1 %v3901_v62  ;;  %v3934_v62 = vld [vmem:[#allocation2 + $0x2f4] ss:$8 sps:$4 sm:$0xff]  }
  0x99   :  { %846 = vmatpush1.bf16.msra.mxu0 %v3828_v44  ;;  %802 = vmatprep.subr.bf16.mxu1 %v3905_v63  ;;  %v4648_v44 = vld [vmem:[#allocation7 + $0x50] sm:$0xff]   ;;  %v3932_v63 = vld [vmem:[#allocation2 + $0x2f0] ss:$8 sps:$4 sm:$0xff]  }
  0x9a   :  { %847 = vmatprep.subr.bf16.mxu0 %v3829_v45  ;;  %v3890_v45 = vld [vmem:[#allocation2 + $0x280] ss:$8 sps:$4 sm:$0xff]  }
  0x9c   :  { %803 = vmatpush1.bf16.msra.mxu1 %v3907_v2  ;;  %v154_v2 = vpack.c.bf16 %v4633_v7, %v4633_v7 }
  0x9d   :  { %848 = vmatpush1.bf16.msra.mxu0 %v3831_v48  ;;  %804 = vmatprep.subr.bf16.mxu1 %v3911_v3  ;;  %v3896_v48 = vld [vmem:[#allocation2 + $0x290] ss:$8 sps:$4 sm:$0xff]   ;;  %v3947_v3 = vld [vmem:[#allocation2 + $0x314] ss:$8 sps:$4 sm:$0xff]  }
  0x9e   :  { %849 = vmatprep.subr.bf16.mxu0 %v3832_v49  ;;  %v3904_v49 = vld [vmem:[#allocation2 + $0x2a4] ss:$8 sps:$4 sm:$0xff]  }
  0xa0   :  { %805 = vmatpush1.bf16.msra.mxu1 %v3913_v9  ;;  %v4490_v9 = vmov 0  }
  0xa1   :  { %850 = vmatpush1.bf16.msra.mxu0 %v3834_v52  ;;  %806 = vmatprep.subr.bf16.mxu1 %v3917_v10  ;;  %v3902_v52 = vld [vmem:[#allocation2 + $0x2a0] ss:$8 sps:$4 sm:$0xff]  }
  0xa2   :  { %851 = vmatprep.subr.bf16.mxu0 %v3835_v53  ;;  %v3910_v53 = vld [vmem:[#allocation2 + $0x2b4] ss:$8 sps:$4 sm:$0xff]   ;;  %v3948_v10 = vld [vmem:[#allocation2 + $0x320] ss:$8 sps:$4 sm:$0xff]  }
  0xa4   :  { %807 = vmatpush1.bf16.msra.mxu1 %v3919_v16  ;;  %v4690_v16 = vld [vmem:[#allocation7 + $0x78] sm:$0xff]  }
  0xa5   :  { %852 = vmatpush1.bf16.msra.mxu0 %v3837_v56  ;;  %808 = vmatprep.subr.bf16.mxu1 %v3923_v17  ;;  %v3916_v56 = vld [vmem:[#allocation2 + $0x2c4] ss:$8 sps:$4 sm:$0xff]  }
  0xa6   :  { %853 = vmatprep.subr.bf16.mxu0 %v3838_v57  ;;  %v3914_v57 = vld [vmem:[#allocation2 + $0x2c0] ss:$8 sps:$4 sm:$0xff]  }
  0xa7   :  { %v4692_v17 = vld [vmem:[#allocation7 + $0x38] sm:$0xff]  }
  0xa8   :  { %809 = vmatpush1.bf16.msra.mxu1 %v3925_v22 }
  0xa9   :  { %854 = vmatpush1.bf16.msra.mxu0 %v3840_v60  ;;  %810 = vmatprep.subr.bf16.mxu1 %v3929_v23  ;;  %v3928_v60 = vld [vmem:[#allocation2 + $0x2e4] ss:$8 sps:$4 sm:$0xff]  }
  0xaa   :  { %855 = vmatprep.subr.bf16.mxu0 %v3841_v61  ;;  %v3926_v61 = vld [vmem:[#allocation2 + $0x2e0] ss:$8 sps:$4 sm:$0xff]  }
  0xac   :  { %811 = vmatpush1.bf16.msra.mxu1 %v3931_v26  ;;  %v104_v26 = vld [vmem:[#allocation5] sm:$0x3] }
  0xad   :  { %856 = vmatpush1.bf16.msra.mxu0 %v3843_v0  ;;  %812 = vmatprep.subr.bf16.mxu1 %v3935_v28  ;;  %v3941_v0 = vld [vmem:[#allocation2 + $0x304] ss:$8 sps:$4 sm:$0xff]  }
  0xae   :  { %866 = vmatprep.subr.bf16.mxu0 %v3847_v1  ;;  %v3939_v1 = vld [vmem:[#allocation2 + $0x300] ss:$8 sps:$4 sm:$0xff]  }
  0xb0   :  { %858 = vmatmul.mubr.bf16.vlgmr.msra.gmra.mrb[0].mxu0 %v152_v4  ;;  %813 = vmatpush1.bf16.msra.mxu1 %v3938_v30  ;;  %v3945_v4 = vld [vmem:[#allocation2 + $0x310] ss:$8 sps:$4 sm:$0xff]  }
  0xb1   :  { %867 = vmatpush1.bf16.msra.mxu0 %v3845_v6  ;;  %898 = vmatprep.mubr.bf16.mxu0 %v155_v13  ;;  %v127_v6 = vcombine.high %v4629_v5, %v4629_v5  ;;  %v4674_v5 = vld [vmem:[#allocation7 + $0x68] sm:$0xff]   ;;  %v4682_v13 = vld [vmem:[#allocation7 + $0x70] sm:$0xff]   ;;  %v4707_v30 = vld [vmem:[%s4846_s0 + $0xc] sm:$0xff] }
  0xb2   :  { %868 = vmatprep.subr.bf16.mxu0 %v3850_v8  ;;  %814 = vmatprep.subr.bf16.mxu1 %v3942_v31  ;;  %v3950_v8 = vld [vmem:[#allocation2 + $0x324] ss:$8 sps:$4 sm:$0xff]  }
  0xb3   :  { %v141_v11 = vrot.slane %v127_v6, %v4609_v18  ;;  %v4008_v6 = vld [vmem:[#allocation2 + $0x404] ss:$8 sps:$4 sm:$0xff]  }
  0xb4   :  { %815 = vmatpush1.bf16.msra.mxu1 %v3944_v34 }
  0xb5   :  { %869 = vmatpush1.bf16.msra.mxu0 %v3848_v12  ;;  %3588 = vmatprep.subr.bf16.mxu1 %v4637_v35  ;;  %v156_v7 = vpack.c.bf16 %v141_v11, %v141_v11  ;;  %v4676_v12 = vld [vmem:[#allocation7 + $0x28] sm:$0xff]  }
  0xb6   :  { %870 = vmatprep.subr.bf16.mxu0 %v3856_v14  ;;  %v4684_v14 = vld [vmem:[#allocation7 + $0x30] sm:$0xff]   ;;  %v4011_v11 = vld [vmem:[#allocation2 + $0x414] ss:$8 sps:$4 sm:$0xff]  }
  0xb7   :  { %817 = vmatmul.mubr.bf16.vlgmr.msra.gmra.mrb[0].mxu1 %v150_v39 }
  0xb8   :  { %3589 = vmatpush3.bf16.msra.mxu1 %v4639_v38 }
  0xb9   :  { %871 = vmatpush1.bf16.msra.mxu0 %v3854_v19  ;;  %3590 = vmatprep.subr.bf16.mxu1 %v4643_v40  ;;  %v3969_v19 = vld [vmem:[#allocation2 + $0x334] ss:$8 sps:$4 sm:$0xff]  }
  0xba   :  { %872 = vmatprep.subr.bf16.mxu0 %v3862_v20 }
  0xbc   :  { %3591 = vmatpush3.bf16.msra.mxu1 %v4646_v43 }
  0xbd   :  { %873 = vmatpush1.bf16.msra.mxu0 %v3860_v24  ;;  %3592 = vmatprep.subr.bf16.mxu1 %v4648_v44 }
  0xbe   :  { %874 = vmatprep.subr.bf16.mxu0 %v3868_v25  ;;  %v262_v25 = vsub.s32 0, %v4606_v15 }
  0xc0   :  { %3593 = vmatpush3.bf16.msra.mxu1 %v4652_v46  ;;  %v4700_v28 = vrot.slane %v104_v26, %v262_v25 }
  0xc1   :  { %875 = vmatpush1.bf16.msra.mxu0 %v3866_v27  ;;  %3594 = vmatprep.subr.bf16.mxu1 %v4654_v47  ;;  %v266_v27 = vsub.s32 1, %v4606_v15 }
  0xc2   :  { %876 = vmatprep.subr.bf16.mxu0 %v3874_v29 }
  0xc3   :  { %v4702_v29 = vrot.slane %v104_v26, %v266_v27  ;;  %v4015_v26 = vld [vmem:[#allocation2 + $0x430] ss:$8 sps:$4 sm:$0xff]  }
  0xc4   :  { %3595 = vmatpush3.bf16.msra.mxu1 %v3958_v50 }
  0xc5   :  { %877 = vmatpush1.bf16.msra.mxu0 %v3872_v32  ;;  %3596 = vmatprep.subr.bf16.mxu1 %v3959_v51 }
  0xc6   :  { %878 = vmatprep.subr.bf16.mxu0 %v3880_v33  ;;  %v4713_v33 = vrot.slane %v4707_v30, %v4609_v18 }
  0xc8   :  { %3597 = vmatpush3.bf16.msra.mxu1 %v3960_v54  ;;  %v1188_v25 = vpack.c.bf16 %v4713_v33, %v4713_v33 }
  0xc9   :  { %879 = vmatpush1.bf16.msra.mxu0 %v3878_v36  ;;  %3598 = vmatprep.subr.bf16.mxu1 %v4674_v5 }
  0xca   :  { %880 = vmatprep.subr.bf16.mxu0 %v3886_v37 }
  0xcc   :  { %3599 = vmatpush3.bf16.msra.mxu1 %v4676_v12 }
  0xcd   :  { %881 = vmatpush1.bf16.msra.mxu0 %v3884_v41  ;;  %3600 = vmatprep.subr.bf16.mxu1 %v4682_v13 }
  0xce   :  { %882 = vmatprep.subr.bf16.mxu0 %v3892_v42 }
  0xd0   :  { %3601 = vmatpush3.bf16.msra.mxu1 %v4684_v14 }
  0xd1   :  { %883 = vmatpush1.bf16.msra.mxu0 %v3890_v45  ;;  %3602 = vmatprep.subr.bf16.mxu1 %v4690_v16 }
  0xd2   :  { %884 = vmatprep.subr.bf16.mxu0 %v3898_v21  ;;  %v3972_v21 = vld [vmem:[#allocation2 + $0x344] ss:$8 sps:$4 sm:$0xff]  }
  0xd4   :  { %3603 = vmatpush3.bf16.msra.mxu1 %v4692_v17 }
  0xd5   :  { %885 = vmatpush1.bf16.msra.mxu0 %v3896_v48  ;;  %1811 = vmatprep.subr.bf16.mxu1 %v3969_v19  ;;  %v3973_v48 = vld [vmem:[#allocation2 + $0x350] ss:$8 sps:$4 sm:$0xff]  }
  0xd6   :  { %886 = vmatprep.subr.bf16.mxu0 %v3904_v49  ;;  %v3978_v49 = vld [vmem:[#allocation2 + $0x364] ss:$8 sps:$4 sm:$0xff]  }
  0xd9   :  { %887 = vmatpush1.bf16.msra.mxu0 %v3902_v52  ;;  %v3979_v52 = vld [vmem:[#allocation2 + $0x370] ss:$8 sps:$4 sm:$0xff]  }
  0xda   :  { %888 = vmatprep.subr.bf16.mxu0 %v3910_v53  ;;  %v3984_v53 = vld [vmem:[#allocation2 + $0x384] ss:$8 sps:$4 sm:$0xff]  }
  0xdd   :  { %889 = vmatpush1.bf16.msra.mxu0 %v3908_v55  ;;  %v3987_v55 = vld [vmem:[#allocation2 + $0x394] ss:$8 sps:$4 sm:$0xff]  }
  0xde   :  { %890 = vmatprep.subr.bf16.mxu0 %v3916_v56  ;;  %v3985_v56 = vld [vmem:[#allocation2 + $0x390] ss:$8 sps:$4 sm:$0xff]  }
  0xe1   :  { %891 = vmatpush1.bf16.msra.mxu0 %v3914_v57  ;;  %v3990_v57 = vld [vmem:[#allocation2 + $0x3a4] ss:$8 sps:$4 sm:$0xff]  }
  0xe2   :  { %892 = vmatprep.subr.bf16.mxu0 %v3922_v58  ;;  %v3988_v58 = vld [vmem:[#allocation2 + $0x3a0] ss:$8 sps:$4 sm:$0xff]  }
  0xe5   :  { %893 = vmatpush1.bf16.msra.mxu0 %v3920_v59  ;;  %v3993_v59 = vld [vmem:[#allocation2 + $0x3b4] ss:$8 sps:$4 sm:$0xff]  }
  0xe6   :  { %894 = vmatprep.subr.bf16.mxu0 %v3928_v60  ;;  %v3991_v60 = vld [vmem:[#allocation2 + $0x3b0] ss:$8 sps:$4 sm:$0xff]  }
  0xe9   :  { %895 = vmatpush1.bf16.msra.mxu0 %v3926_v61  ;;  %v3996_v61 = vld [vmem:[#allocation2 + $0x3c4] ss:$8 sps:$4 sm:$0xff]  }
  0xea   :  { %896 = vmatprep.subr.bf16.mxu0 %v3934_v62  ;;  %v3994_v62 = vld [vmem:[#allocation2 + $0x3c0] ss:$8 sps:$4 sm:$0xff]  }
  0xed   :  { %897 = vmatpush1.bf16.msra.mxu0 %v3932_v63  ;;  %v3999_v63 = vld [vmem:[#allocation2 + $0x3d4] ss:$8 sps:$4 sm:$0xff]  }
  0xee   :  { %907 = vmatprep.subr.bf16.mxu0 %v3941_v0  ;;  %v3997_v0 = vld [vmem:[#allocation2 + $0x3d0] ss:$8 sps:$4 sm:$0xff]  }
  0xf0   :  { %899 = vmatmul.mubr.bf16.vlgmr.msra.gmra.mrb[0].mxu0 %v154_v2  ;;  %v4000_v2 = vld [vmem:[#allocation2 + $0x3e0] ss:$8 sps:$4 sm:$0xff]  }
  0xf1   :  { %908 = vmatpush1.bf16.msra.mxu0 %v3939_v1  ;;  %939 = vmatprep.mubr.bf16.mxu0 %v4490_v9  ;;  %v4002_v1 = vld [vmem:[#allocation2 + $0x3e4] ss:$8 sps:$4 sm:$0xff]  }
  0xf2   :  { %909 = vmatprep.subr.bf16.mxu0 %v3947_v3  ;;  %v4005_v3 = vld [vmem:[#allocation2 + $0x3f4] ss:$8 sps:$4 sm:$0xff]  }
  0xf5   :  { %910 = vmatpush1.bf16.msra.mxu0 %v3945_v4  ;;  %v4003_v4 = vld [vmem:[#allocation2 + $0x3f0] ss:$8 sps:$4 sm:$0xff]  }
  0xf6   :  { %911 = vmatprep.subr.bf16.mxu0 %v3950_v8  ;;  %v4006_v8 = vld [vmem:[#allocation2 + $0x400] ss:$8 sps:$4 sm:$0xff]  }
  0xf9   :  { %912 = vmatpush1.bf16.msra.mxu0 %v3948_v10  ;;  %v1148_v10 = vcombine.high %v4707_v30, %v4707_v30  ;;  %v4020_v30 = vld [vmem:[#allocation2 + $0x444] ss:$8 sps:$4 sm:$0xff]  }
  0xfa   :  { %3610 = vmatprep.subr.bf16.mxu0 %v4637_v35 }
  0xfb   :  { %v4720_v19 = vrot.slane %v1148_v10, %v4609_v18  ;;  %v4073_v10 = vld [vmem:[#allocation2 + $0x560] ss:$8 sps:$4 sm:$0xff]  }
  0xfc   :  { %3339 = vmatmul.mubr.msk.bf16.vlgmr.msra.gmra.mrb[0].mxu0 %vm780_vm0, %v156_v7  ;;  %v4009_v7 = vld [vmem:[#allocation2 + $0x410] ss:$8 sps:$4 sm:$0xff]  }
  0xfd   :  { %3611 = vmatpush3.bf16.msra.mxu0 %v4639_v38  ;;  %v1163_v38 = vcombine.high %v4713_v33, %v4713_v33  ;;  %v4491_v33 = vmov 0.0  }
  0xfe   :  { %3612 = vmatprep.subr.bf16.mxu0 %v4643_v40 }
 0x101   :  { %3613 = vmatpush3.bf16.msra.mxu0 %v4646_v43  ;;  %v3967_v43 = vld [vmem:[#allocation2 + $0x330] ss:$8 sps:$4 sm:$0xff]  }
 0x102   :  { %3614 = vmatprep.subr.bf16.mxu0 %v4648_v44  ;;  %v1189_v44 = vpack.c.bf16 %v1163_v38, %v1163_v38  ;;  %v4032_v38 = vld [vmem:[#allocation2 + $0x484] ss:$8 sps:$4 sm:$0xff]  }
 0x105   :  { %3615 = vmatpush3.bf16.msra.mxu0 %v4652_v46  ;;  %v3970_v46 = vld [vmem:[#allocation2 + $0x340] ss:$8 sps:$4 sm:$0xff]  }
 0x106   :  { %3616 = vmatprep.subr.bf16.mxu0 %v4654_v47  ;;  %v3975_v47 = vld [vmem:[#allocation2 + $0x354] ss:$8 sps:$4 sm:$0xff]  }
 0x109   :  { %3617 = vmatpush3.bf16.msra.mxu0 %v3958_v50  ;;  %v3976_v50 = vld [vmem:[#allocation2 + $0x360] ss:$8 sps:$4 sm:$0xff]  }
 0x10a   :  { %3618 = vmatprep.subr.bf16.mxu0 %v3959_v51  ;;  %v3981_v51 = vld [vmem:[#allocation2 + $0x374] ss:$8 sps:$4 sm:$0xff]  }
 0x10d   :  { %3619 = vmatpush3.bf16.msra.mxu0 %v3960_v54  ;;  %v3982_v54 = vld [vmem:[#allocation2 + $0x380] ss:$8 sps:$4 sm:$0xff]  }
 0x10e   :  { %3620 = vmatprep.subr.bf16.mxu0 %v4674_v5 }
 0x111   :  { %3621 = vmatpush3.bf16.msra.mxu0 %v4676_v12 }
 0x112   :  { %3622 = vmatprep.subr.bf16.mxu0 %v4682_v13 }
 0x115   :  { %3623 = vmatpush3.bf16.msra.mxu0 %v4684_v14 }
 0x116   :  { %3624 = vmatprep.subr.bf16.mxu0 %v4690_v16 }
 0x119   :  { %3625 = vmatpush3.bf16.msra.mxu0 %v4692_v17 }
 0x11a   :  { %3681 = vmatprep.subr.bf16.mxu0 %v4491_v33 }
 0x18a   :  { %v818_v20 = vpop.f32.mrb[0].mxu1 }
 0x18b   :  { %v820_v22 = vpop.f32.mrb[1].mxu1  ;;  %v819_v31 = vadd.f32 %v818_v20, %v4700_v28  ;;  %v4014_v20 = vld [vmem:[#allocation2 + $0x424] ss:$8 sps:$4 sm:$0xff]  }
 0x18c   :  { %v822_v23 = vpop.f32.mrb[2].mxu1  ;;  %v821_v32 = vadd.f32 %v820_v22, %v4702_v29  ;;  %v4012_v22 = vld [vmem:[#allocation2 + $0x420] ss:$8 sps:$4 sm:$0xff]  }
 0x18d   :  { %v823_v24 = vpop.f32.mrb[3].mxu1  ;;  %v1164_v23 = vcombine.high %v4720_v19, %v4720_v19 }
 0x18e   :  { %v4017_v24 = vld [vmem:[#allocation2 + $0x434] ss:$8 sps:$4 sm:$0xff]  }
 0x18f   :  { %v1191_v27 = vpack.c.bf16 %v1164_v23, %v1164_v23  ;;  %v4082_v23 = vld [vmem:[#allocation2 + $0x590] ss:$8 sps:$4 sm:$0xff]  }
 0x1cf   :  { %v941_v34 = vpop.f32.mrb[0].mxu0 }
 0x1d0   :  { %v3742_v35 = vadd.f32 %v941_v34, %v819_v31  ;;  %v943_v15 = vpop.f32.mrb[1].mxu0  ;;  %v4018_v31 = vld [vmem:[#allocation2 + $0x440] ss:$8 sps:$4 sm:$0xff]   ;;  %v4021_v34 = vld [vmem:[#allocation2 + $0x450] ss:$8 sps:$4 sm:$0xff]  }
 0x1d1   :  { %v3744_v36 = vadd.f32 %v943_v15, %v821_v32  ;;  %v945_v37 = vpop.f32.mrb[2].mxu0  ;;  %v4023_v32 = vld [vmem:[#allocation2 + $0x454] ss:$8 sps:$4 sm:$0xff]   ;;  %v4024_v15 = vld [vmem:[#allocation2 + $0x460] ss:$8 sps:$4 sm:$0xff]  }
 0x1d2   :  { %v948_v39 = vmax.f32 %v3742_v35, 0.0  ;;  %v946_v40 = vpop.f32.mrb[3].mxu0  ;;  %v4026_v35 = vld [vmem:[#allocation2 + $0x464] ss:$8 sps:$4 sm:$0xff]   ;;  %v4027_v37 = vld [vmem:[#allocation2 + $0x470] ss:$8 sps:$4 sm:$0xff]  }
 0x1d3   :  { %v949_v41 = vmax.f32 %v3744_v36, 0.0  ;;  %v4029_v36 = vld [vmem:[#allocation2 + $0x474] ss:$8 sps:$4 sm:$0xff]  }
 0x1d4   :  { %v950_v45 = vpack.c.bf16 %v948_v39, %v948_v39  ;;  %v4030_v39 = vld [vmem:[#allocation2 + $0x480] ss:$8 sps:$4 sm:$0xff]   ;;  %v4035_v40 = vld [vmem:[#allocation2 + $0x494] ss:$8 sps:$4 sm:$0xff]  }
 0x1d5   :  { %v951_v42 = vpack.c.bf16 %v949_v41, %v949_v41  ;;  %v4033_v41 = vld [vmem:[#allocation2 + $0x490] ss:$8 sps:$4 sm:$0xff]  }
 0x1d7   :  { %1118 = vmatprep.mubr.bf16.mxu1 %v951_v42  ;;  %v4038_v42 = vld [vmem:[#allocation2 + $0x4a4] ss:$8 sps:$4 sm:$0xff]  }
 0x1d8   :  { %1119 = vmatmul.mubr.bf16.vlgmr.msra.gmra.mrb[4].mxu1 %v950_v45  ;;  %v4039_v45 = vld [vmem:[#allocation2 + $0x4b0] ss:$8 sps:$4 sm:$0xff]  }
 0x1d9   :  { %1812 = vmatpush1.bf16.msra.mxu1 %v3967_v43  ;;  %1843 = vmatprep.mubr.bf16.mxu1 %v1189_v44  ;;  %v4036_v43 = vld [vmem:[#allocation2 + $0x4a0] ss:$8 sps:$4 sm:$0xff]   ;;  %v4041_v44 = vld [vmem:[#allocation2 + $0x4b4] ss:$8 sps:$4 sm:$0xff]  }
 0x1da   :  { %1813 = vmatprep.subr.bf16.mxu1 %v3972_v21  ;;  %v4044_v21 = vld [vmem:[#allocation2 + $0x4c4] ss:$8 sps:$4 sm:$0xff]  }
 0x1dd   :  { %1814 = vmatpush1.bf16.msra.mxu1 %v3970_v46  ;;  %v4042_v46 = vld [vmem:[#allocation2 + $0x4c0] ss:$8 sps:$4 sm:$0xff]  }
 0x1de   :  { %1815 = vmatprep.subr.bf16.mxu1 %v3975_v47  ;;  %v4047_v47 = vld [vmem:[#allocation2 + $0x4d4] ss:$8 sps:$4 sm:$0xff]  }
 0x1e1   :  { %1816 = vmatpush1.bf16.msra.mxu1 %v3973_v48  ;;  %v4045_v48 = vld [vmem:[#allocation2 + $0x4d0] ss:$8 sps:$4 sm:$0xff]  }
 0x1e2   :  { %1817 = vmatprep.subr.bf16.mxu1 %v3978_v49  ;;  %v4050_v49 = vld [vmem:[#allocation2 + $0x4e4] ss:$8 sps:$4 sm:$0xff]  }
 0x1e5   :  { %1818 = vmatpush1.bf16.msra.mxu1 %v3976_v50  ;;  %v4048_v50 = vld [vmem:[#allocation2 + $0x4e0] ss:$8 sps:$4 sm:$0xff]  }
 0x1e6   :  { %1819 = vmatprep.subr.bf16.mxu1 %v3981_v51  ;;  %v4053_v51 = vld [vmem:[#allocation2 + $0x4f4] ss:$8 sps:$4 sm:$0xff]  }
 0x1e9   :  { %1820 = vmatpush1.bf16.msra.mxu1 %v3979_v52  ;;  %v4051_v52 = vld [vmem:[#allocation2 + $0x4f0] ss:$8 sps:$4 sm:$0xff]  }
 0x1ea   :  { %1821 = vmatprep.subr.bf16.mxu1 %v3984_v53  ;;  %v4056_v53 = vld [vmem:[#allocation2 + $0x504] ss:$8 sps:$4 sm:$0xff]  }
 0x1ed   :  { %1822 = vmatpush1.bf16.msra.mxu1 %v3982_v54  ;;  %v4054_v54 = vld [vmem:[#allocation2 + $0x500] ss:$8 sps:$4 sm:$0xff]  }
 0x1ee   :  { %1823 = vmatprep.subr.bf16.mxu1 %v3987_v55  ;;  %v4059_v55 = vld [vmem:[#allocation2 + $0x514] ss:$8 sps:$4 sm:$0xff]  }
 0x1f1   :  { %1824 = vmatpush1.bf16.msra.mxu1 %v3985_v56  ;;  %v4730_v56 = vld [vmem:[%s4846_s0 + $0x14] sm:$0x3f] }
 0x1f2   :  { %1825 = vmatprep.subr.bf16.mxu1 %v3990_v57  ;;  %v4057_v57 = vld [vmem:[#allocation2 + $0x510] ss:$8 sps:$4 sm:$0xff]  }
 0x1f5   :  { %1826 = vmatpush1.bf16.msra.mxu1 %v3988_v58  ;;  %v4734_v58 = vrot.slane %v4730_v56, %v4609_v18 }
 0x1f6   :  { %1827 = vmatprep.subr.bf16.mxu1 %v3993_v59  ;;  %v4062_v59 = vld [vmem:[#allocation2 + $0x524] ss:$8 sps:$4 sm:$0xff]  }
 0x1f9   :  { %1828 = vmatpush1.bf16.msra.mxu1 %v3991_v60  ;;  %v4060_v60 = vld [vmem:[#allocation2 + $0x520] ss:$8 sps:$4 sm:$0xff]  }
 0x1fa   :  { %1829 = vmatprep.subr.bf16.mxu1 %v3996_v61  ;;  %v1180_v61 = vcombine.high %v4734_v58, %v4734_v58 }
 0x1fd   :  { %1830 = vmatpush1.bf16.msra.mxu1 %v3994_v62  ;;  %v4066_v62 = vld [vmem:[#allocation2 + $0x534] ss:$8 sps:$4 sm:$0xff]  }
 0x1fe   :  { %1831 = vmatprep.subr.bf16.mxu1 %v3999_v63  ;;  %v1190_v63 = vpack.c.bf16 %v4720_v19, %v4720_v19  ;;  %v4081_v19 = vld [vmem:[#allocation2 + $0x584] ss:$8 sps:$4 sm:$0xff]  }
 0x201   :  { %1832 = vmatpush1.bf16.msra.mxu1 %v3997_v0  ;;  %v4064_v0 = vld [vmem:[#allocation2 + $0x530] ss:$8 sps:$4 sm:$0xff]  }
 0x202   :  { %1833 = vmatprep.subr.bf16.mxu1 %v4002_v1  ;;  %v1193_v1 = vpack.c.bf16 %v1180_v61, %v1180_v61 }
 0x205   :  { %1834 = vmatpush1.bf16.msra.mxu1 %v4000_v2  ;;  %v4069_v2 = vld [vmem:[#allocation2 + $0x544] ss:$8 sps:$4 sm:$0xff]  }
 0x206   :  { %1835 = vmatprep.subr.bf16.mxu1 %v4005_v3  ;;  %v4067_v3 = vld [vmem:[#allocation2 + $0x540] ss:$8 sps:$4 sm:$0xff]  }
 0x209   :  { %1836 = vmatpush1.bf16.msra.mxu1 %v4003_v4  ;;  %v4072_v4 = vld [vmem:[#allocation2 + $0x554] ss:$8 sps:$4 sm:$0xff]  }
 0x20a   :  { %1837 = vmatprep.subr.bf16.mxu1 %v4008_v6  ;;  %v4070_v6 = vld [vmem:[#allocation2 + $0x550] ss:$8 sps:$4 sm:$0xff]  }
 0x20d   :  { %1838 = vmatpush1.bf16.msra.mxu1 %v4006_v8  ;;  %v4075_v8 = vld [vmem:[#allocation2 + $0x564] ss:$8 sps:$4 sm:$0xff]  }
 0x20e   :  { %1839 = vmatprep.subr.bf16.mxu1 %v4011_v11  ;;  %v4078_v11 = vld [vmem:[#allocation2 + $0x574] ss:$8 sps:$4 sm:$0xff]  }
 0x211   :  { %1840 = vmatpush1.bf16.msra.mxu1 %v4009_v7  ;;  %v4076_v7 = vld [vmem:[#allocation2 + $0x570] ss:$8 sps:$4 sm:$0xff]  }
 0x212   :  { %1841 = vmatprep.subr.bf16.mxu1 %v4014_v20  ;;  %v4079_v20 = vld [vmem:[#allocation2 + $0x580] ss:$8 sps:$4 sm:$0xff]  }
 0x215   :  { %1842 = vmatpush1.bf16.msra.mxu1 %v4012_v22  ;;  %v4084_v22 = vld [vmem:[#allocation2 + $0x594] ss:$8 sps:$4 sm:$0xff]  }
 0x216   :  { %1852 = vmatprep.subr.bf16.mxu1 %v4017_v24  ;;  %v4087_v24 = vld [vmem:[#allocation2 + $0x5a4] ss:$8 sps:$4 sm:$0xff]  }
 0x218   :  { %1844 = vmatmul.mubr.bf16.vlgmr.msra.gmra.mrb[8].mxu1 %v1188_v25  ;;  %v4085_v25 = vld [vmem:[#allocation2 + $0x5a0] ss:$8 sps:$4 sm:$0xff]  }
 0x219   :  { %1853 = vmatpush1.bf16.msra.mxu1 %v4015_v26  ;;  %1884 = vmatprep.mubr.bf16.mxu1 %v1191_v27  ;;  %v4090_v26 = vld [vmem:[#allocation2 + $0x5b4] ss:$8 sps:$4 sm:$0xff]   ;;  %v4088_v27 = vld [vmem:[#allocation2 + $0x5b0] ss:$8 sps:$4 sm:$0xff]  }
 0x21a   :  { %1854 = vmatprep.subr.bf16.mxu1 %v4020_v30  ;;  %v4093_v30 = vld [vmem:[#allocation2 + $0x5c4] ss:$8 sps:$4 sm:$0xff]  }
 0x21d   :  { %1855 = vmatpush1.bf16.msra.mxu1 %v4018_v31  ;;  %v4091_v31 = vld [vmem:[#allocation2 + $0x5c0] ss:$8 sps:$4 sm:$0xff]  }
 0x21e   :  { %1856 = vmatprep.subr.bf16.mxu1 %v4023_v32  ;;  %v4096_v32 = vld [vmem:[#allocation2 + $0x5d4] ss:$8 sps:$4 sm:$0xff]  }
 0x221   :  { %1857 = vmatpush1.bf16.msra.mxu1 %v4021_v34  ;;  %v4094_v34 = vld [vmem:[#allocation2 + $0x5d0] ss:$8 sps:$4 sm:$0xff]  }
 0x222   :  { %1858 = vmatprep.subr.bf16.mxu1 %v4026_v35  ;;  %v4099_v35 = vld [vmem:[#allocation2 + $0x5e4] ss:$8 sps:$4 sm:$0xff]  }
 0x225   :  { %1859 = vmatpush1.bf16.msra.mxu1 %v4024_v15  ;;  %v4097_v15 = vld [vmem:[#allocation2 + $0x5e0] ss:$8 sps:$4 sm:$0xff]  }
 0x226   :  { %1860 = vmatprep.subr.bf16.mxu1 %v4029_v36  ;;  %v4102_v36 = vld [vmem:[#allocation2 + $0x5f4] ss:$8 sps:$4 sm:$0xff]  }
 0x229   :  { %1861 = vmatpush1.bf16.msra.mxu1 %v4027_v37  ;;  %v4100_v37 = vld [vmem:[#allocation2 + $0x5f0] ss:$8 sps:$4 sm:$0xff]  }
 0x22a   :  { %1862 = vmatprep.subr.bf16.mxu1 %v4032_v38  ;;  %v4105_v38 = vld [vmem:[#allocation2 + $0x604] ss:$8 sps:$4 sm:$0xff]  }
 0x22d   :  { %1863 = vmatpush1.bf16.msra.mxu1 %v4030_v39  ;;  %v4103_v39 = vld [vmem:[#allocation2 + $0x600] ss:$8 sps:$4 sm:$0xff]  }
 0x22e   :  { %1864 = vmatprep.subr.bf16.mxu1 %v4035_v40  ;;  %v4108_v40 = vld [vmem:[#allocation2 + $0x614] ss:$8 sps:$4 sm:$0xff]  }
 0x231   :  { %1865 = vmatpush1.bf16.msra.mxu1 %v4033_v41  ;;  %v4106_v41 = vld [vmem:[#allocation2 + $0x610] ss:$8 sps:$4 sm:$0xff]  }
 0x232   :  { %1866 = vmatprep.subr.bf16.mxu1 %v4038_v42  ;;  %v4111_v42 = vld [vmem:[#allocation2 + $0x624] ss:$8 sps:$4 sm:$0xff]  }
 0x235   :  { %1867 = vmatpush1.bf16.msra.mxu1 %v4036_v43  ;;  %v4109_v43 = vld [vmem:[#allocation2 + $0x620] ss:$8 sps:$4 sm:$0xff]  }
 0x236   :  { %1868 = vmatprep.subr.bf16.mxu1 %v4041_v44  ;;  %v4115_v44 = vld [vmem:[#allocation2 + $0x634] ss:$8 sps:$4 sm:$0xff]  }
 0x239   :  { %1869 = vmatpush1.bf16.msra.mxu1 %v4039_v45  ;;  %v1192_v45 = vpack.c.bf16 %v4734_v58, %v4734_v58 }
 0x23a   :  { %1870 = vmatprep.subr.bf16.mxu1 %v4044_v21  ;;  %v4113_v21 = vld [vmem:[#allocation2 + $0x630] ss:$8 sps:$4 sm:$0xff]  }
 0x23d   :  { %1871 = vmatpush1.bf16.msra.mxu1 %v4042_v46  ;;  %v4118_v46 = vld [vmem:[#allocation2 + $0x644] ss:$8 sps:$4 sm:$0xff]  }
 0x23e   :  { %1872 = vmatprep.subr.bf16.mxu1 %v4047_v47  ;;  %v1165_v47 = vcombine.high %v4730_v56, %v4730_v56 }
 0x241   :  { %1873 = vmatpush1.bf16.msra.mxu1 %v4045_v48  ;;  %v4116_v48 = vld [vmem:[#allocation2 + $0x640] ss:$8 sps:$4 sm:$0xff]  }
 0x242   :  { %1874 = vmatprep.subr.bf16.mxu1 %v4050_v49  ;;  %v4121_v49 = vld [vmem:[#allocation2 + $0x654] ss:$8 sps:$4 sm:$0xff]  }
 0x245   :  { %1875 = vmatpush1.bf16.msra.mxu1 %v4048_v50  ;;  %v1179_v50 = vrot.slane %v1165_v47, %v4609_v18 }
 0x246   :  { %1876 = vmatprep.subr.bf16.mxu1 %v4053_v51  ;;  %v4119_v51 = vld [vmem:[#allocation2 + $0x650] ss:$8 sps:$4 sm:$0xff]  }
 0x249   :  { %1877 = vmatpush1.bf16.msra.mxu1 %v4051_v52  ;;  %v1194_v52 = vpack.c.bf16 %v1179_v50, %v1179_v50 }
 0x24a   :  { %1878 = vmatprep.subr.bf16.mxu1 %v4056_v53  ;;  %v4122_v53 = vld [vmem:[#allocation10] sm:$0xff]  }
 0x24d   :  { %1879 = vmatpush1.bf16.msra.mxu1 %v4054_v54  ;;  %v4123_v54 = vld [vmem:[#allocation10 + $0x8] sm:$0xff]  }
 0x24e   :  { %1880 = vmatprep.subr.bf16.mxu1 %v4059_v55  ;;  %v4124_v55 = vld [vmem:[#allocation10 + $0x10] sm:$0xff]  }
 0x251   :  { %1881 = vmatpush1.bf16.msra.mxu1 %v4057_v57 }
 0x252   :  { %1882 = vmatprep.subr.bf16.mxu1 %v4062_v59 }
 0x255   :  { %1883 = vmatpush1.bf16.msra.mxu1 %v4060_v60  ;;  %v4125_v60 = vld [vmem:[#allocation10 + $0x18] sm:$0xff]  }
 0x256   :  { %1893 = vmatprep.subr.bf16.mxu1 %v4066_v62  ;;  %v4126_v62 = vld [vmem:[#allocation10 + $0x20] sm:$0xff]  }
 0x258   :  { %1885 = vmatmul.mubr.bf16.vlgmr.msra.gmra.mrb[8].mxu1 %v1190_v63  ;;  %v4127_v63 = vld [vmem:[#allocation10 + $0x28] sm:$0xff]  }
 0x259   :  { %1894 = vmatpush1.bf16.msra.mxu1 %v4064_v0  ;;  %1925 = vmatprep.mubr.bf16.mxu1 %v1193_v1  ;;  %v4755_v0 = vld [vmem:[#allocation8] ss:$0 sm:$0xff]  ;;  %v4128_v1 = vld [vmem:[#allocation10 + $0x30] sm:$0xff]  }
 0x25a   :  { %1895 = vmatprep.subr.bf16.mxu1 %v4069_v2 }
 0x25d   :  { %1896 = vmatpush1.bf16.msra.mxu1 %v4067_v3  ;;  %v4129_v3 = vld [vmem:[#allocation10 + $0x38] sm:$0xff]  }
 0x25e   :  { %1897 = vmatprep.subr.bf16.mxu1 %v4072_v4 }
 0x261   :  { %1898 = vmatpush1.bf16.msra.mxu1 %v4070_v6 }
 0x262   :  { %1899 = vmatprep.subr.bf16.mxu1 %v4075_v8  ;;  %v4305_v8 = vld [vmem:[#allocation7 + $0x40] sm:$0xff]  }
 0x265   :  { %1900 = vmatpush1.bf16.msra.mxu1 %v4073_v10  ;;  %v4306_v10 = vld [vmem:[#allocation7] sm:$0xff]  }
 0x266   :  { %1901 = vmatprep.subr.bf16.mxu1 %v4078_v11  ;;  %v4307_v11 = vld [vmem:[#allocation7 + $0x48] sm:$0xff]  }
 0x269   :  { %1902 = vmatpush1.bf16.msra.mxu1 %v4076_v7  ;;  %v4308_v7 = vld [vmem:[#allocation7 + $0x8] sm:$0xff]  }
 0x26a   :  { %1903 = vmatprep.subr.bf16.mxu1 %v4081_v19  ;;  %v4309_v19 = vld [vmem:[#allocation7 + $0x50] sm:$0xff]  }
 0x26d   :  { %1904 = vmatpush1.bf16.msra.mxu1 %v4079_v20  ;;  %v4310_v20 = vld [vmem:[#allocation7 + $0x10] sm:$0xff]  }
 0x26e   :  { %1905 = vmatprep.subr.bf16.mxu1 %v4084_v22  ;;  %v4311_v22 = vld [vmem:[#allocation7 + $0x58] sm:$0xff]  }
 0x271   :  { %1906 = vmatpush1.bf16.msra.mxu1 %v4082_v23  ;;  %v4312_v23 = vld [vmem:[#allocation7 + $0x18] sm:$0xff]  }
 0x272   :  { %1907 = vmatprep.subr.bf16.mxu1 %v4087_v24  ;;  %v4313_v24 = vld [vmem:[#allocation7 + $0x60] sm:$0xff]  }
 0x275   :  { %1908 = vmatpush1.bf16.msra.mxu1 %v4085_v25  ;;  %v4314_v25 = vld [vmem:[#allocation7 + $0x20] sm:$0xff]  }
 0x276   :  { %1909 = vmatprep.subr.bf16.mxu1 %v4090_v26 }
 0x279   :  { %1910 = vmatpush1.bf16.msra.mxu1 %v4088_v27 }
 0x27a   :  { %1911 = vmatprep.subr.bf16.mxu1 %v4093_v30 }
 0x27d   :  { %1912 = vmatpush1.bf16.msra.mxu1 %v4091_v31 }
 0x27e   :  { %1913 = vmatprep.subr.bf16.mxu1 %v4096_v32 }
 0x281   :  { %1914 = vmatpush1.bf16.msra.mxu1 %v4094_v34 }
 0x282   :  { %1915 = vmatprep.subr.bf16.mxu1 %v4099_v35 }
 0x285   :  { %1916 = vmatpush1.bf16.msra.mxu1 %v4097_v15 }
 0x286   :  { %1917 = vmatprep.subr.bf16.mxu1 %v4102_v36  ;;  %v4134_v36 = vld [vmem:[#allocation10 + $0x60] sm:$0xff]  }
 0x289   :  { %1918 = vmatpush1.bf16.msra.mxu1 %v4100_v37  ;;  %v4135_v37 = vld [vmem:[#allocation10 + $0x68] sm:$0xff]  }
 0x28a   :  { %1919 = vmatprep.subr.bf16.mxu1 %v4105_v38 }
 0x28d   :  { %1920 = vmatpush1.bf16.msra.mxu1 %v4103_v39 }
 0x28e   :  { %1921 = vmatprep.subr.bf16.mxu1 %v4108_v40 }
 0x291   :  { %1922 = vmatpush1.bf16.msra.mxu1 %v4106_v41 }
 0x292   :  { %1923 = vmatprep.subr.bf16.mxu1 %v4111_v42  ;;  %v4136_v42 = vld [vmem:[#allocation10 + $0x70] sm:$0xff]  }
 0x295   :  { %1924 = vmatpush1.bf16.msra.mxu1 %v4109_v43  ;;  %v4137_v43 = vld [vmem:[#allocation10 + $0x78] sm:$0xff]  }
 0x296   :  { %1934 = vmatprep.subr.bf16.mxu1 %v4115_v44  ;;  %v4140_v44 = vld [vmem:[#allocation2 + $0x664] ss:$8 sps:$4 sm:$0xff]  }
 0x298   :  { %1926 = vmatmul.mubr.bf16.vlgmr.msra.gmra.mrb[8].mxu1 %v1192_v45  ;;  %v4783_v45 = vld [vmem:[%s4846_s0 + $0x18] sm:$0xff] }
 0x299   :  { %1935 = vmatpush1.bf16.msra.mxu1 %v4113_v21  ;;  %1966 = vmatprep.mubr.bf16.mxu1 %v4490_v9  ;;  %v4787_v21 = vrot.slane %v4783_v45, %v4609_v18 }
 0x29a   :  { %1936 = vmatprep.subr.bf16.mxu1 %v4118_v46 }
 0x29d   :  { %1937 = vmatpush1.bf16.msra.mxu1 %v4116_v48 }
 0x29e   :  { %1938 = vmatprep.subr.bf16.mxu1 %v4121_v49 }
 0x2a1   :  { %1939 = vmatpush1.bf16.msra.mxu1 %v4119_v51  ;;  %v2233_v51 = vcombine.high %v4787_v21, %v4787_v21 }
 0x2a2   :  { %3701 = vmatprep.subr.bf16.mxu1 %v4491_v33 }
 0x2a4   :  { %3459 = vmatmul.mubr.msk.bf16.vlgmr.msra.gmra.mrb[8].mxu1 %vm780_vm0, %v1194_v52 }
 0x2a5   :  { %3702 = vmatpush3.bf16.msra.mxu1 %v4122_v53  ;;  %3717 = vmatprep.mubr.msk.bf16.mxu1 %vm4492_vm1, %v4491_v33 }
 0x2a6   :  { %3703 = vmatprep.subr.bf16.mxu1 %v4491_v33 }
 0x2a9   :  { %3704 = vmatpush3.bf16.msra.mxu1 %v4123_v54  ;;  %v4138_v54 = vld [vmem:[#allocation2 + $0x660] ss:$8 sps:$4 sm:$0xff]  }
 0x2aa   :  { %3705 = vmatprep.subr.bf16.mxu1 %v4491_v33 }
 0x2ab   :  { %v3604_v56 = vpop.f32.mrb[4].mxu1 }
 0x2ac   :  { %v3605_v57 = vpop.f32.mrb[5].mxu1 }
 0x2ad   :  { %v3606_v58 = vadd.f32 %v3605_v57, %v3604_v56  ;;  %3706 = vmatpush3.bf16.msra.mxu1 %v4124_v55  ;;  %v3607_v59 = vpop.f32.mrb[6].mxu1  ;;  %v2259_v55 = vpack.c.bf16 %v2233_v51, %v2233_v51  ;;  %v4143_v57 = vld [vmem:[#allocation2 + $0x674] ss:$8 sps:$4 sm:$0xff]   ;;  %v4212_v51 = vld [vmem:[#allocation2 + $0x7e4] ss:$8 sps:$4 sm:$0xff]  }
 0x2ae   :  { %v3608_v61 = vpop.f32.mrb[7].mxu1  ;;  %3707 = vmatprep.subr.bf16.mxu1 %v4491_v33  ;;  %v4146_v59 = vld [vmem:[#allocation2 + $0x684] ss:$8 sps:$4 sm:$0xff]  }
 0x2af   :  { %v1121_v2 = vadd.f32 %v3606_v58, %v4755_v0  ;;  %v4141_v58 = vld [vmem:[#allocation2 + $0x670] ss:$8 sps:$4 sm:$0xff]   ;;  %v4149_v61 = vld [vmem:[#allocation2 + $0x694] ss:$8 sps:$4 sm:$0xff]  }
 0x2b1   :  { %3708 = vmatpush3.bf16.msra.mxu1 %v4125_v60  ;;  %v1126_v4 = vmax.f32 %v1121_v2, 0.0  ;;  %v4144_v60 = vld [vmem:[#allocation2 + $0x680] ss:$8 sps:$4 sm:$0xff]   ;;  %v4155_v2 = vld [vmem:[#allocation2 + $0x6b4] ss:$8 sps:$4 sm:$0xff]  }
 0x2b2   :  { %3709 = vmatprep.subr.bf16.mxu1 %v4491_v33 }
 0x2b3   :  { %v1127_v6 = vpack.c.bf16 %v1126_v4, %v1126_v4  ;;  %v4158_v4 = vld [vmem:[#allocation2 + $0x6c4] ss:$8 sps:$4 sm:$0xff]  }
 0x2b5   :  { %3710 = vmatpush3.bf16.msra.mxu1 %v4126_v62  ;;  %v4147_v62 = vld [vmem:[#allocation2 + $0x690] ss:$8 sps:$4 sm:$0xff]  }
 0x2b6   :  { %3711 = vmatprep.subr.bf16.mxu1 %v4491_v33 }
 0x2b9   :  { %3712 = vmatpush3.bf16.msra.mxu1 %v4127_v63  ;;  %v4152_v63 = vld [vmem:[#allocation2 + $0x6a4] ss:$8 sps:$4 sm:$0xff]  }
 0x2ba   :  { %3713 = vmatprep.subr.bf16.mxu1 %v4491_v33 }
 0x2bd   :  { %3714 = vmatpush3.bf16.msra.mxu1 %v4128_v1  ;;  %v4150_v1 = vld [vmem:[#allocation2 + $0x6a0] ss:$8 sps:$4 sm:$0xff]  }
 0x2be   :  { %3715 = vmatprep.subr.bf16.mxu1 %v4491_v33 }
 0x2c1   :  { %3716 = vmatpush3.bf16.msra.mxu1 %v4129_v3  ;;  %v4153_v3 = vld [vmem:[#allocation2 + $0x6b0] ss:$8 sps:$4 sm:$0xff]  }
 0x2c2   :  { %3650 = vmatprep.subr.bf16.mxu1 %v4305_v8  ;;  %v4161_v8 = vld [vmem:[#allocation2 + $0x6d4] ss:$8 sps:$4 sm:$0xff]  }
 0x2c4   :  { %3718 = vmatmul.mubr.bf16.vlgmr.msra.gmra.mrb[12].mxu1 %v1127_v6  ;;  %v4156_v6 = vld [vmem:[#allocation2 + $0x6c0] ss:$8 sps:$4 sm:$0xff]  }
 0x2c5   :  { %3651 = vmatpush3.bf16.msra.mxu1 %v4306_v10  ;;  %v4159_v10 = vld [vmem:[#allocation2 + $0x6d0] ss:$8 sps:$4 sm:$0xff]  }
 0x2c6   :  { %3652 = vmatprep.subr.bf16.mxu1 %v4307_v11  ;;  %v4164_v11 = vld [vmem:[#allocation2 + $0x6e4] ss:$8 sps:$4 sm:$0xff]  }
 0x2c9   :  { %3653 = vmatpush3.bf16.msra.mxu1 %v4308_v7  ;;  %v4162_v7 = vld [vmem:[#allocation2 + $0x6e0] ss:$8 sps:$4 sm:$0xff]  }
 0x2ca   :  { %3654 = vmatprep.subr.bf16.mxu1 %v4309_v19  ;;  %v4167_v19 = vld [vmem:[#allocation2 + $0x6f4] ss:$8 sps:$4 sm:$0xff]  }
 0x2cd   :  { %3655 = vmatpush3.bf16.msra.mxu1 %v4310_v20  ;;  %v4165_v20 = vld [vmem:[#allocation2 + $0x6f0] ss:$8 sps:$4 sm:$0xff]  }
 0x2ce   :  { %3656 = vmatprep.subr.bf16.mxu1 %v4311_v22  ;;  %v4170_v22 = vld [vmem:[#allocation2 + $0x704] ss:$8 sps:$4 sm:$0xff]  }
 0x2d1   :  { %3657 = vmatpush3.bf16.msra.mxu1 %v4312_v23  ;;  %v4168_v23 = vld [vmem:[#allocation2 + $0x700] ss:$8 sps:$4 sm:$0xff]  }
 0x2d2   :  { %3658 = vmatprep.subr.bf16.mxu1 %v4313_v24  ;;  %v4173_v24 = vld [vmem:[#allocation2 + $0x714] ss:$8 sps:$4 sm:$0xff]  }
 0x2d5   :  { %3659 = vmatpush3.bf16.msra.mxu1 %v4314_v25  ;;  %v4171_v25 = vld [vmem:[#allocation2 + $0x710] ss:$8 sps:$4 sm:$0xff]  }
 0x2d6   :  { %3660 = vmatprep.subr.bf16.mxu1 %v4674_v5 }
 0x2d9   :  { %3661 = vmatpush3.bf16.msra.mxu1 %v4676_v12 }
 0x2da   :  { %3662 = vmatprep.subr.bf16.mxu1 %v4682_v13  ;;  %v4130_v13 = vld [vmem:[#allocation10 + $0x40] sm:$0xff]  }
 0x2dd   :  { %3663 = vmatpush3.bf16.msra.mxu1 %v4684_v14  ;;  %v4131_v14 = vld [vmem:[#allocation10 + $0x48] sm:$0xff]  }
 0x2de   :  { %3664 = vmatprep.subr.bf16.mxu1 %v4690_v16  ;;  %v4132_v16 = vld [vmem:[#allocation10 + $0x50] sm:$0xff]  }
 0x2e1   :  { %3665 = vmatpush3.bf16.msra.mxu1 %v4692_v17  ;;  %v4133_v17 = vld [vmem:[#allocation10 + $0x58] sm:$0xff]  }
 0x2e2   :  { %3721 = vmatprep.subr.bf16.mxu1 %v4491_v33 }
 0x377   :  { %v1968_v26 = vpop.f32.mrb[8].mxu1 }
 0x378   :  { %v3745_v27 = vadd.f32 %v1968_v26, %v4700_v28  ;;  %v1970_v30 = vpop.f32.mrb[9].mxu1  ;;  %v4176_v26 = vld [vmem:[#allocation2 + $0x724] ss:$8 sps:$4 sm:$0xff]  }
 0x379   :  { %v3746_v31 = vadd.f32 %v1970_v30, %v4702_v29  ;;  %v1972_v32 = vpop.f32.mrb[10].mxu1  ;;  %v4179_v30 = vld [vmem:[#allocation2 + $0x734] ss:$8 sps:$4 sm:$0xff]  }
 0x37a   :  { %v1975_v5 = vmax.f32 %v3745_v27, 0.0  ;;  %v1973_v34 = vpop.f32.mrb[11].mxu1  ;;  %v4174_v27 = vld [vmem:[#allocation2 + $0x720] ss:$8 sps:$4 sm:$0xff]   ;;  %v2218_v32 = vcombine.high %v4783_v45, %v4783_v45 }
 0x37b   :  { %v1976_v12 = vmax.f32 %v3746_v31, 0.0  ;;  %v4177_v31 = vld [vmem:[#allocation2 + $0x730] ss:$8 sps:$4 sm:$0xff]   ;;  %v4180_v34 = vld [vmem:[#allocation2 + $0x740] ss:$8 sps:$4 sm:$0xff]  }
 0x37c   :  { %v1977_v15 = vpack.c.bf16 %v1975_v5, %v1975_v5  ;;  %v4182_v5 = vld [vmem:[#allocation2 + $0x744] ss:$8 sps:$4 sm:$0xff]   ;;  %v4198_v45 = vld [vmem:[#allocation2 + $0x7a0] ss:$8 sps:$4 sm:$0xff]  }
 0x37d   :  { %v1978_v35 = vpack.c.bf16 %v1976_v12, %v1976_v12  ;;  %v4795_v12 = vrot.slane %v2218_v32, %v4609_v18  ;;  %v4250_v32 = vld [vmem:[#allocation2 + $0x8b0] ss:$8 sps:$4 sm:$0xff]  }
 0x37f   :  { %2011 = vmatprep.mubr.bf16.mxu0 %v1978_v35  ;;  %v4185_v35 = vld [vmem:[#allocation2 + $0x754] ss:$8 sps:$4 sm:$0xff]  }
 0x380   :  { %2012 = vmatmul.mubr.bf16.vlgmr.msra.gmra.mrb[4].mxu0 %v1977_v15  ;;  %v2234_v15 = vcombine.high %v4795_v12, %v4795_v12 }
 0x381   :  { %3682 = vmatpush3.bf16.msra.mxu0 %v4130_v13  ;;  %3697 = vmatprep.mubr.msk.bf16.mxu0 %vm4492_vm1, %v4491_v33  ;;  %v4183_v13 = vld [vmem:[#allocation2 + $0x750] ss:$8 sps:$4 sm:$0xff]  }
 0x382   :  { %3683 = vmatprep.subr.bf16.mxu0 %v4491_v33 }
 0x385   :  { %3684 = vmatpush3.bf16.msra.mxu0 %v4131_v14  ;;  %v4188_v14 = vld [vmem:[#allocation2 + $0x764] ss:$8 sps:$4 sm:$0xff]  }
 0x386   :  { %3685 = vmatprep.subr.bf16.mxu0 %v4491_v33 }
 0x389   :  { %3686 = vmatpush3.bf16.msra.mxu0 %v4132_v16  ;;  %v2258_v16 = vpack.c.bf16 %v4787_v21, %v4787_v21  ;;  %v4203_v21 = vld [vmem:[#allocation2 + $0x7b4] ss:$8 sps:$4 sm:$0xff]  }
 0x38a   :  { %3687 = vmatprep.subr.bf16.mxu0 %v4491_v33 }
 0x38d   :  { %3688 = vmatpush3.bf16.msra.mxu0 %v4133_v17  ;;  %v4186_v17 = vld [vmem:[#allocation2 + $0x760] ss:$8 sps:$4 sm:$0xff]  }
 0x38e   :  { %3689 = vmatprep.subr.bf16.mxu0 %v4491_v33 }
 0x391   :  { %3690 = vmatpush3.bf16.msra.mxu0 %v4134_v36  ;;  %v2261_v36 = vpack.c.bf16 %v2234_v15, %v2234_v15  ;;  %v4259_v15 = vld [vmem:[#allocation2 + $0x8e0] ss:$8 sps:$4 sm:$0xff]  }
 0x392   :  { %3691 = vmatprep.subr.bf16.mxu0 %v4491_v33 }
 0x395   :  { %3692 = vmatpush3.bf16.msra.mxu0 %v4135_v37  ;;  %v4191_v37 = vld [vmem:[#allocation2 + $0x774] ss:$8 sps:$4 sm:$0xff]  }
 0x396   :  { %3693 = vmatprep.subr.bf16.mxu0 %v4491_v33 }
 0x397   :  { %v4777_v38 = vpop.f32.mrb[12].mxu1 }
 0x398   :  { %v3719_v39 = vpop.f32.mrb[13].mxu1 }
 0x399   :  { %v2211_v40 = vpop.f32.mrb[14].mxu1  ;;  %3694 = vmatpush3.bf16.msra.mxu0 %v4136_v42  ;;  %v4189_v39 = vld [vmem:[#allocation2 + $0x770] ss:$8 sps:$4 sm:$0xff]   ;;  %v4197_v42 = vld [vmem:[#allocation2 + $0x794] ss:$8 sps:$4 sm:$0xff]  }
 0x39a   :  { %v3720_v41 = vpop.f32.mrb[15].mxu1  ;;  %3695 = vmatprep.subr.bf16.mxu0 %v4491_v33  ;;  %v4194_v40 = vld [vmem:[#allocation2 + $0x784] ss:$8 sps:$4 sm:$0xff]  }
 0x39b   :  { %v4192_v41 = vld [vmem:[#allocation2 + $0x780] ss:$8 sps:$4 sm:$0xff]  }
 0x39d   :  { %3696 = vmatpush3.bf16.msra.mxu0 %v4137_v43  ;;  %v4195_v43 = vld [vmem:[#allocation2 + $0x790] ss:$8 sps:$4 sm:$0xff]  }
 0x39e   :  { %2881 = vmatprep.subr.bf16.mxu0 %v4140_v44  ;;  %v4200_v44 = vld [vmem:[#allocation2 + $0x7a4] ss:$8 sps:$4 sm:$0xff]  }
 0x453   :  { %v3626_v46 = vpop.f32.mrb[4].mxu0 }
 0x454   :  { %v3627_v47 = vpop.f32.mrb[5].mxu0 }
 0x455   :  { %v3628_v48 = vadd.f32 %v3627_v47, %v3626_v46  ;;  %v3629_v49 = vpop.f32.mrb[6].mxu0  ;;  %v4201_v46 = vld [vmem:[#allocation2 + $0x7b0] ss:$8 sps:$4 sm:$0xff]   ;;  %v4206_v47 = vld [vmem:[#allocation2 + $0x7c4] ss:$8 sps:$4 sm:$0xff]  }
 0x456   :  { %v3630_v50 = vpop.f32.mrb[7].mxu0  ;;  %v4209_v49 = vld [vmem:[#allocation2 + $0x7d4] ss:$8 sps:$4 sm:$0xff]  }
 0x457   :  { %v2014_v52 = vadd.f32 %v3628_v48, %v4755_v0  ;;  %v4204_v48 = vld [vmem:[#allocation2 + $0x7c0] ss:$8 sps:$4 sm:$0xff]   ;;  %v4207_v50 = vld [vmem:[#allocation2 + $0x7d0] ss:$8 sps:$4 sm:$0xff]  }
 0x459   :  { %v2019_v53 = vmax.f32 %v2014_v52, 0.0  ;;  %v4210_v52 = vld [vmem:[#allocation2 + $0x7e0] ss:$8 sps:$4 sm:$0xff]  }
 0x45b   :  { %v2020_v56 = vpack.c.bf16 %v2019_v53, %v2019_v53  ;;  %v4215_v53 = vld [vmem:[#allocation2 + $0x7f4] ss:$8 sps:$4 sm:$0xff]  }
 0x45d   :  { %3698 = vmatmul.mubr.bf16.vlgmr.msra.gmra.mrb[8].mxu0 %v2020_v56  ;;  %v4216_v56 = vld [vmem:[#allocation2 + $0x800] ss:$8 sps:$4 sm:$0xff]  }
 0x45e   :  { %2882 = vmatpush1.bf16.msra.mxu0 %v4138_v54  ;;  %2913 = vmatprep.mubr.bf16.mxu0 %v2259_v55  ;;  %v4213_v54 = vld [vmem:[#allocation2 + $0x7f0] ss:$8 sps:$4 sm:$0xff]   ;;  %v4218_v55 = vld [vmem:[#allocation2 + $0x804] ss:$8 sps:$4 sm:$0xff]  }
 0x45f   :  { %2883 = vmatprep.subr.bf16.mxu0 %v4143_v57  ;;  %v4221_v57 = vld [vmem:[#allocation2 + $0x814] ss:$8 sps:$4 sm:$0xff]  }
 0x462   :  { %2884 = vmatpush1.bf16.msra.mxu0 %v4141_v58  ;;  %v4219_v58 = vld [vmem:[#allocation2 + $0x810] ss:$8 sps:$4 sm:$0xff]  }
 0x463   :  { %2885 = vmatprep.subr.bf16.mxu0 %v4146_v59  ;;  %v4224_v59 = vld [vmem:[#allocation2 + $0x824] ss:$8 sps:$4 sm:$0xff]  }
 0x466   :  { %2886 = vmatpush1.bf16.msra.mxu0 %v4144_v60  ;;  %v4222_v60 = vld [vmem:[#allocation2 + $0x820] ss:$8 sps:$4 sm:$0xff]  }
 0x467   :  { %2887 = vmatprep.subr.bf16.mxu0 %v4149_v61  ;;  %v4227_v61 = vld [vmem:[#allocation2 + $0x834] ss:$8 sps:$4 sm:$0xff]  }
 0x46a   :  { %2888 = vmatpush1.bf16.msra.mxu0 %v4147_v62  ;;  %v4225_v62 = vld [vmem:[#allocation2 + $0x830] ss:$8 sps:$4 sm:$0xff]  }
 0x46b   :  { %2889 = vmatprep.subr.bf16.mxu0 %v4152_v63  ;;  %v4230_v63 = vld [vmem:[#allocation2 + $0x844] ss:$8 sps:$4 sm:$0xff]  }
 0x46e   :  { %2890 = vmatpush1.bf16.msra.mxu0 %v4150_v1  ;;  %v4804_v1 = vld [vmem:[%s4846_s0 + $0x20] sm:$0x3f]  ;;  %s4493_s0 = smov [#allocation13]  }
 0x46f   :  { %2891 = vmatprep.subr.bf16.mxu0 %v4155_v2  ;;  %v4228_v2 = vld [vmem:[#allocation2 + $0x840] ss:$8 sps:$4 sm:$0xff]   ;;  %s3225_s4 = sshll.u32 %s4493_s0, 4  ;;  %s3226_s4 = int_to_ptr.vmem [resolvable:$true] %s3225_s4 }
 0x470   :  { %s4447_s27 = scalar_lea.vmem %s3226_s4, 32  ;;  %p4452_p7 = scmp.lt.s32.totalorder %s3226_s4, %s3226_s4 }
 0x471   :  { %p4448_p6 = scmp.ne.s32.totalorder %s3226_s4, %s4447_s27  ;;  %p4453_p8 = scmp.lt.s32.totalorder %s4447_s27, %s4447_s27 }
 0x472   :  { %2892 = vmatpush1.bf16.msra.mxu0 %v4153_v3  ;;  %v4808_v3 = vrot.slane %v4804_v1, %v4609_v18 }
 0x473   :  { %2893 = vmatprep.subr.bf16.mxu0 %v4158_v4  ;;  %v4233_v4 = vld [vmem:[#allocation2 + $0x854] ss:$8 sps:$4 sm:$0xff]   ;;  %p4454_p9 = por %p4453_p8, %p4452_p7 }
 0x475   :  { %p4455_p10 = pnand %p4454_p9, %p4448_p6 }
 0x476   :  { %2894 = vmatpush1.bf16.msra.mxu0 %v4156_v6  ;;  %v4231_v6 = vld [vmem:[#allocation2 + $0x850] ss:$8 sps:$4 sm:$0xff]  }
 0x477   :  { %2895 = vmatprep.subr.bf16.mxu0 %v4161_v8  ;;  %v2250_v8 = vcombine.high %v4808_v3, %v4808_v3 }
 0x47a   :  { %2896 = vmatpush1.bf16.msra.mxu0 %v4159_v10  ;;  %v4237_v10 = vld [vmem:[#allocation2 + $0x864] ss:$8 sps:$4 sm:$0xff]  }
 0x47b   :  { %2897 = vmatprep.subr.bf16.mxu0 %v4164_v11  ;;  %v2260_v11 = vpack.c.bf16 %v4795_v12, %v4795_v12  ;;  %v4258_v12 = vld [vmem:[#allocation2 + $0x8d4] ss:$8 sps:$4 sm:$0xff]  }
 0x47e   :  { %2898 = vmatpush1.bf16.msra.mxu0 %v4162_v7  ;;  %v4235_v7 = vld [vmem:[#allocation2 + $0x860] ss:$8 sps:$4 sm:$0xff]  }
 0x47f   :  { %2899 = vmatprep.subr.bf16.mxu0 %v4167_v19  ;;  %v2263_v19 = vpack.c.bf16 %v2250_v8, %v2250_v8  ;;  %v4293_v8 = vld [vmem:[#allocation10 + $0x80] sm:$0xff]  }
 0x482   :  { %2900 = vmatpush1.bf16.msra.mxu0 %v4165_v20  ;;  %v4240_v20 = vld [vmem:[#allocation2 + $0x874] ss:$8 sps:$4 sm:$0xff]  }
 0x483   :  { %2901 = vmatprep.subr.bf16.mxu0 %v4170_v22  ;;  %v4238_v22 = vld [vmem:[#allocation2 + $0x870] ss:$8 sps:$4 sm:$0xff]  }
 0x486   :  { %2902 = vmatpush1.bf16.msra.mxu0 %v4168_v23  ;;  %v4243_v23 = vld [vmem:[#allocation2 + $0x884] ss:$8 sps:$4 sm:$0xff]  }
 0x487   :  { %2903 = vmatprep.subr.bf16.mxu0 %v4173_v24  ;;  %v4241_v24 = vld [vmem:[#allocation2 + $0x880] ss:$8 sps:$4 sm:$0xff]  }
 0x48a   :  { %2904 = vmatpush1.bf16.msra.mxu0 %v4171_v25  ;;  %v4246_v25 = vld [vmem:[#allocation2 + $0x894] ss:$8 sps:$4 sm:$0xff]  }
 0x48b   :  { %2905 = vmatprep.subr.bf16.mxu0 %v4176_v26  ;;  %v4244_v26 = vld [vmem:[#allocation2 + $0x890] ss:$8 sps:$4 sm:$0xff]  }
 0x48e   :  { %2906 = vmatpush1.bf16.msra.mxu0 %v4174_v27  ;;  %v4249_v27 = vld [vmem:[#allocation2 + $0x8a4] ss:$8 sps:$4 sm:$0xff]  }
 0x48f   :  { %2907 = vmatprep.subr.bf16.mxu0 %v4179_v30  ;;  %v4247_v30 = vld [vmem:[#allocation2 + $0x8a0] ss:$8 sps:$4 sm:$0xff]  }
 0x492   :  { %2908 = vmatpush1.bf16.msra.mxu0 %v4177_v31  ;;  %v4252_v31 = vld [vmem:[#allocation2 + $0x8b4] ss:$8 sps:$4 sm:$0xff]  }
 0x493   :  { %2909 = vmatprep.subr.bf16.mxu0 %v4182_v5  ;;  %v4255_v5 = vld [vmem:[#allocation2 + $0x8c4] ss:$8 sps:$4 sm:$0xff]  }
 0x496   :  { %2910 = vmatpush1.bf16.msra.mxu0 %v4180_v34  ;;  %v4253_v34 = vld [vmem:[#allocation2 + $0x8c0] ss:$8 sps:$4 sm:$0xff]  }
 0x497   :  { %2911 = vmatprep.subr.bf16.mxu0 %v4185_v35  ;;  %v4256_v35 = vld [vmem:[#allocation2 + $0x8d0] ss:$8 sps:$4 sm:$0xff]  }
 0x49a   :  { %2912 = vmatpush1.bf16.msra.mxu0 %v4183_v13  ;;  %v4261_v13 = vld [vmem:[#allocation2 + $0x8e4] ss:$8 sps:$4 sm:$0xff]  }
 0x49b   :  { %2922 = vmatprep.subr.bf16.mxu0 %v4188_v14  ;;  %v4264_v14 = vld [vmem:[#allocation2 + $0x8f4] ss:$8 sps:$4 sm:$0xff]  }
 0x49d   :  { %2914 = vmatmul.mubr.bf16.vlgmr.msra.gmra.mrb[12].mxu0 %v2258_v16  ;;  %v4262_v16 = vld [vmem:[#allocation2 + $0x8f0] ss:$8 sps:$4 sm:$0xff]  }
 0x49e   :  { %2923 = vmatpush1.bf16.msra.mxu0 %v4186_v17  ;;  %2954 = vmatprep.mubr.bf16.mxu0 %v2261_v36  ;;  %v4267_v17 = vld [vmem:[#allocation2 + $0x904] ss:$8 sps:$4 sm:$0xff]   ;;  %v4265_v36 = vld [vmem:[#allocation2 + $0x900] ss:$8 sps:$4 sm:$0xff]  }
 0x49f   :  { %2924 = vmatprep.subr.bf16.mxu0 %v4191_v37  ;;  %v4270_v37 = vld [vmem:[#allocation2 + $0x914] ss:$8 sps:$4 sm:$0xff]  }
 0x4a2   :  { %2925 = vmatpush1.bf16.msra.mxu0 %v4189_v39  ;;  %v4268_v39 = vld [vmem:[#allocation2 + $0x910] ss:$8 sps:$4 sm:$0xff]  }
 0x4a3   :  { %2926 = vmatprep.subr.bf16.mxu0 %v4194_v40  ;;  %v4273_v40 = vld [vmem:[#allocation2 + $0x924] ss:$8 sps:$4 sm:$0xff]  }
 0x4a6   :  { %2927 = vmatpush1.bf16.msra.mxu0 %v4192_v41  ;;  %v4271_v41 = vld [vmem:[#allocation2 + $0x920] ss:$8 sps:$4 sm:$0xff]  }
 0x4a7   :  { %2928 = vmatprep.subr.bf16.mxu0 %v4197_v42  ;;  %v4276_v42 = vld [vmem:[#allocation2 + $0x934] ss:$8 sps:$4 sm:$0xff]  }
 0x4aa   :  { %2929 = vmatpush1.bf16.msra.mxu0 %v4195_v43  ;;  %v4274_v43 = vld [vmem:[#allocation2 + $0x930] ss:$8 sps:$4 sm:$0xff]  }
 0x4ab   :  { %2930 = vmatprep.subr.bf16.mxu0 %v4200_v44  ;;  %v4279_v44 = vld [vmem:[#allocation2 + $0x944] ss:$8 sps:$4 sm:$0xff]  }
 0x4ae   :  { %2931 = vmatpush1.bf16.msra.mxu0 %v4198_v45  ;;  %v4277_v45 = vld [vmem:[#allocation2 + $0x940] ss:$8 sps:$4 sm:$0xff]  }
 0x4af   :  { %2932 = vmatprep.subr.bf16.mxu0 %v4203_v21  ;;  %v4282_v21 = vld [vmem:[#allocation2 + $0x954] ss:$8 sps:$4 sm:$0xff]  }
 0x4b2   :  { %2933 = vmatpush1.bf16.msra.mxu0 %v4201_v46  ;;  %v4280_v46 = vld [vmem:[#allocation2 + $0x950] ss:$8 sps:$4 sm:$0xff]  }
 0x4b3   :  { %2934 = vmatprep.subr.bf16.mxu0 %v4206_v47  ;;  %v4286_v47 = vld [vmem:[#allocation2 + $0x964] ss:$8 sps:$4 sm:$0xff]  }
 0x4b6   :  { %2935 = vmatpush1.bf16.msra.mxu0 %v4204_v48  ;;  %v2262_v48 = vpack.c.bf16 %v4808_v3, %v4808_v3 }
 0x4b7   :  { %2936 = vmatprep.subr.bf16.mxu0 %v4209_v49  ;;  %v4284_v49 = vld [vmem:[#allocation2 + $0x960] ss:$8 sps:$4 sm:$0xff]  }
 0x4ba   :  { %2937 = vmatpush1.bf16.msra.mxu0 %v4207_v50  ;;  %v4289_v50 = vld [vmem:[#allocation2 + $0x974] ss:$8 sps:$4 sm:$0xff]  }
 0x4bb   :  { %2938 = vmatprep.subr.bf16.mxu0 %v4212_v51  ;;  %v2235_v51 = vcombine.high %v4804_v1, %v4804_v1 }
 0x4be   :  { %2939 = vmatpush1.bf16.msra.mxu0 %v4210_v52  ;;  %v4287_v52 = vld [vmem:[#allocation2 + $0x970] ss:$8 sps:$4 sm:$0xff]  }
 0x4bf   :  { %2940 = vmatprep.subr.bf16.mxu0 %v4215_v53  ;;  %v4292_v53 = vld [vmem:[#allocation2 + $0x984] ss:$8 sps:$4 sm:$0xff]  }
 0x4c2   :  { %2941 = vmatpush1.bf16.msra.mxu0 %v4213_v54  ;;  %v2249_v54 = vrot.slane %v2235_v51, %v4609_v18 }
 0x4c3   :  { %2942 = vmatprep.subr.bf16.mxu0 %v4218_v55  ;;  %v4290_v55 = vld [vmem:[#allocation2 + $0x980] ss:$8 sps:$4 sm:$0xff]  }
 0x4c6   :  { %2943 = vmatpush1.bf16.msra.mxu0 %v4216_v56  ;;  %v2264_v56 = vpack.c.bf16 %v2249_v54, %v2249_v54 }
 0x4c7   :  { %2944 = vmatprep.subr.bf16.mxu0 %v4221_v57 }
 0x4ca   :  { %2945 = vmatpush1.bf16.msra.mxu0 %v4219_v58 }
 0x4cb   :  { %2946 = vmatprep.subr.bf16.mxu0 %v4224_v59 }
 0x4ce   :  { %2947 = vmatpush1.bf16.msra.mxu0 %v4222_v60 }
 0x4cf   :  { %2948 = vmatprep.subr.bf16.mxu0 %v4227_v61 }
 0x4d2   :  { %2949 = vmatpush1.bf16.msra.mxu0 %v4225_v62 }
 0x4d3   :  { %2950 = vmatprep.subr.bf16.mxu0 %v4230_v63 }
 0x4d6   :  { %2951 = vmatpush1.bf16.msra.mxu0 %v4228_v2 }
 0x4d7   :  { %2952 = vmatprep.subr.bf16.mxu0 %v4233_v4 }
 0x4da   :  { %2953 = vmatpush1.bf16.msra.mxu0 %v4231_v6 }
 0x4db   :  { %2963 = vmatprep.subr.bf16.mxu0 %v4237_v10 }
 0x4dd   :  { %2955 = vmatmul.mubr.bf16.vlgmr.msra.gmra.mrb[12].mxu0 %v2260_v11  ;;  %v4297_v11 = vld [vmem:[#allocation10 + $0xa0] sm:$0xff]  }
 0x4de   :  { %2964 = vmatpush1.bf16.msra.mxu0 %v4235_v7  ;;  %2995 = vmatprep.mubr.bf16.mxu0 %v2263_v19  ;;  %v4298_v7 = vld [vmem:[#allocation10 + $0xa8] sm:$0xff]   ;;  %v4299_v19 = vld [vmem:[#allocation10 + $0xb0] sm:$0xff]  }
 0x4df   :  { %2965 = vmatprep.subr.bf16.mxu0 %v4240_v20  ;;  %v4300_v20 = vld [vmem:[#allocation10 + $0xb8] sm:$0xff]  }
 0x4e2   :  { %2966 = vmatpush1.bf16.msra.mxu0 %v4238_v22 }
 0x4e3   :  { %2967 = vmatprep.subr.bf16.mxu0 %v4243_v23 }
 0x4e6   :  { %2968 = vmatpush1.bf16.msra.mxu0 %v4241_v24 }
 0x4e7   :  { %2969 = vmatprep.subr.bf16.mxu0 %v4246_v25 }
 0x4ea   :  { %2970 = vmatpush1.bf16.msra.mxu0 %v4244_v26 }
 0x4eb   :  { %2971 = vmatprep.subr.bf16.mxu0 %v4249_v27 }
 0x4ee   :  { %2972 = vmatpush1.bf16.msra.mxu0 %v4247_v30 }
 0x4ef   :  { %2973 = vmatprep.subr.bf16.mxu0 %v4252_v31 }
 0x4f2   :  { %2974 = vmatpush1.bf16.msra.mxu0 %v4250_v32 }
 0x4f3   :  { %2975 = vmatprep.subr.bf16.mxu0 %v4255_v5  ;;  %v3587_v5 = vld [vmem:[#allocation11] ss:$0 sm:$0xff] }
 0x4f6   :  { %2976 = vmatpush1.bf16.msra.mxu0 %v4253_v34 }
 0x4f7   :  { %2977 = vmatprep.subr.bf16.mxu0 %v4258_v12 }
 0x4fa   :  { %2978 = vmatpush1.bf16.msra.mxu0 %v4256_v35 }
 0x4fb   :  { %2979 = vmatprep.subr.bf16.mxu0 %v4261_v13 }
 0x4fe   :  { %2980 = vmatpush1.bf16.msra.mxu0 %v4259_v15 }
 0x4ff   :  { %2981 = vmatprep.subr.bf16.mxu0 %v4264_v14 }
 0x502   :  { %2982 = vmatpush1.bf16.msra.mxu0 %v4262_v16 }
 0x503   :  { %2983 = vmatprep.subr.bf16.mxu0 %v4267_v17 }
 0x506   :  { %2984 = vmatpush1.bf16.msra.mxu0 %v4265_v36 }
 0x507   :  { %2985 = vmatprep.subr.bf16.mxu0 %v4270_v37 }
 0x50a   :  { %2986 = vmatpush1.bf16.msra.mxu0 %v4268_v39 }
 0x50b   :  { %2987 = vmatprep.subr.bf16.mxu0 %v4273_v40 }
 0x50e   :  { %2988 = vmatpush1.bf16.msra.mxu0 %v4271_v41 }
 0x50f   :  { %2989 = vmatprep.subr.bf16.mxu0 %v4276_v42 }
 0x512   :  { %2990 = vmatpush1.bf16.msra.mxu0 %v4274_v43 }
 0x513   :  { %2991 = vmatprep.subr.bf16.mxu0 %v4279_v44 }
 0x516   :  { %2992 = vmatpush1.bf16.msra.mxu0 %v4277_v45 }
 0x517   :  { %2993 = vmatprep.subr.bf16.mxu0 %v4282_v21 }
 0x51a   :  { %2994 = vmatpush1.bf16.msra.mxu0 %v4280_v46 }
 0x51b   :  { %3004 = vmatprep.subr.bf16.mxu0 %v4286_v47 }
 0x51d   :  { %2996 = vmatmul.mubr.bf16.vlgmr.msra.gmra.mrb[12].mxu0 %v2262_v48 }
 0x51e   :  { %3005 = vmatpush1.bf16.msra.mxu0 %v4284_v49  ;;  %3036 = vmatprep.mubr.bf16.mxu0 %v4490_v9 }
 0x51f   :  { %3006 = vmatprep.subr.bf16.mxu0 %v4289_v50 }
 0x522   :  { %3007 = vmatpush1.bf16.msra.mxu0 %v4287_v52 }
 0x523   :  { %3008 = vmatprep.subr.bf16.mxu0 %v4292_v53 }
 0x526   :  { %3009 = vmatpush1.bf16.msra.mxu0 %v4290_v55 }
 0x529   :  { %3578 = vmatmul.mubr.msk.bf16.vlgmr.msra.gmra.mrb[12].mxu0 %vm780_vm0, %v2264_v56 }
 0x530   :  { %v2120_v57 = vpop.f32.mrb[8].mxu0 }
 0x531   :  { %v2209_v58 = vadd.f32 %v4777_v38, %v2120_v57  ;;  %v3699_v59 = vpop.f32.mrb[9].mxu0  ;;  %v4294_v38 = vld [vmem:[#allocation10 + $0x88] sm:$0xff]  }
 0x532   :  { %v2123_v60 = vpop.f32.mrb[10].mxu0 }
 0x533   :  { %v3700_v61 = vpop.f32.mrb[11].mxu0 }
 0x5fc   :  { %v3038_v62 = vpop.f32.mrb[12].mxu0 }
 0x5fd   :  { %v3747_v9 = vadd.f32 %v3038_v62, %v4700_v28  ;;  %v3040_v63 = vpop.f32.mrb[13].mxu0  ;;  %v4295_v28 = vld [vmem:[#allocation10 + $0x90] sm:$0xff]  }
 0x5fe   :  { %v3748_v1 = vadd.f32 %v3040_v63, %v4702_v29  ;;  %v3042_v18 = vpop.f32.mrb[14].mxu0  ;;  %v4296_v29 = vld [vmem:[#allocation10 + $0x98] sm:$0xff]  }
 0x5ff   :  { %v3045_v2 = vmax.f32 %v3747_v9, 0.0  ;;  %v3043_v3 = vpop.f32.mrb[15].mxu0 }
 0x600   :  { %v3046_v4 = vmax.f32 %v3748_v1, 0.0 }
 0x601   :  { %v3047_v10 = vpack.c.bf16 %v3045_v2, %v3045_v2 }
 0x602   :  { %v3048_v6 = vpack.c.bf16 %v3046_v4, %v3046_v4 }
 0x604   :  { %3081 = vmatprep.mubr.bf16.mxu1 %v3048_v6 }
 0x605   :  { %3082 = vmatmul.mubr.bf16.vlgmr.msra.gmra.mrb[16].mxu1 %v3047_v10 }
 0x606   :  { %3722 = vmatpush3.bf16.msra.mxu1 %v4293_v8  ;;  %3737 = vmatprep.mubr.msk.bf16.mxu1 %vm4492_vm1, %v4491_v33 }
 0x607   :  { %3723 = vmatprep.subr.bf16.mxu1 %v4491_v33 }
 0x60a   :  { %3724 = vmatpush3.bf16.msra.mxu1 %v4294_v38 }
 0x60b   :  { %3725 = vmatprep.subr.bf16.mxu1 %v4491_v33 }
 0x60e   :  { %3726 = vmatpush3.bf16.msra.mxu1 %v4295_v28 }
 0x60f   :  { %3727 = vmatprep.subr.bf16.mxu1 %v4491_v33 }
 0x612   :  { %3728 = vmatpush3.bf16.msra.mxu1 %v4296_v29 }
 0x613   :  { %3729 = vmatprep.subr.bf16.mxu1 %v4491_v33 }
 0x616   :  { %3730 = vmatpush3.bf16.msra.mxu1 %v4297_v11 }
 0x617   :  { %3731 = vmatprep.subr.bf16.mxu1 %v4491_v33 }
 0x61a   :  { %3732 = vmatpush3.bf16.msra.mxu1 %v4298_v7 }
 0x61b   :  { %3733 = vmatprep.subr.bf16.mxu1 %v4491_v33 }
 0x61e   :  { %3734 = vmatpush3.bf16.msra.mxu1 %v4299_v19 }
 0x61f   :  { %3735 = vmatprep.subr.bf16.mxu1 %v4491_v33 }
 0x622   :  { %3736 = vmatpush3.bf16.msra.mxu1 %v4300_v20 }
 0x6d8   :  { %v3666_v22 = vpop.f32.mrb[16].mxu1 }
 0x6d9   :  { %v3667_v23 = vpop.f32.mrb[17].mxu1 }
 0x6da   :  { %v3668_v24 = vadd.f32 %v3667_v23, %v3666_v22  ;;  %v3669_v25 = vpop.f32.mrb[18].mxu1 }
 0x6db   :  { %v3670_v26 = vpop.f32.mrb[19].mxu1 }
 0x6dc   :  { %v3084_v27 = vadd.f32 %v3668_v24, %v4755_v0 }
 0x6de   :  { %v3089_v30 = vmax.f32 %v3084_v27, 0.0 }
 0x6e0   :  { %v3090_v31 = vpack.c.bf16 %v3089_v30, %v3089_v30 }
 0x6e2   :  { %3738 = vmatmul.mubr.bf16.vlgmr.msra.gmra.mrb[20].mxu1 %v3090_v31 }
 0x7b5   :  { %v3190_v32 = vpop.f32.mrb[20].mxu1 }
 0x7b6   :  { %v3196_v34 = vadd.f32 %v3190_v32, %v2209_v58  ;;  %v3739_v12 = vpop.f32.mrb[21].mxu1 }
 0x7b7   :  { %v3193_v35 = vpop.f32.mrb[22].mxu1 }
 0x7b8   :  { %v3740_v13 = vpop.f32.mrb[23].mxu1  ;;  %v3204_v33 = vadd.f32 %v3587_v5, %v3196_v34 }
 0x7ba   :  { %v3206_v15 = vsel %vm3205_vm2, %v3204_v33, -inf }
 0x7bb   :  { %3207 = vmax.xlane.f32.xlu0 %v3206_v15 }
 0x848   :  { %v3208_v14 = vpop.xlane.xlu0 %3207 }
 0x849   :  { %v3209_v16 = vsub.f32 %v3204_v33, %v3208_v14 }
 0x84b   :  { %v3210_v17 = vmul.f32 1.442695, %v3209_v16 }
 0x84d   :  { %4301 = vpow2.f32 %v3210_v17 }
 0x857   :  { %v4302_v36 = vpop.eup %4301 }
 0x858   :  { %v3212_v37 = vsel %vm3205_vm2, %v4302_v36, 0.0 }
 0x859   :  { %3213 = vadd.xlane.f32.xlu0 %v3212_v37 }
 0x8e6   :  { %v3214_v0 = vpop.xlane.xlu0 %3213 }
 0x8e7   :  { %4303 = vlog2.f32 %v3214_v0 }
 0x8f1   :  { %v4304_v39 = vpop.eup %4303 }
 0x8f2   :  { %v3216_v40 = vmul.f32 0.6931472, %v4304_v39 }
 0x8f4   :  { %v3217_v41 = vsub.f32 %v3209_v16, %v3216_v40 }
 0x8f6   :  { %3218 = vst [vmem:[#allocation13] sm:$0x3] %v3217_v41 }
 0x8f7   :  { %4458 = shalt.err (!%p4455_p10)
}
 0x8f8   :  { %s4459_s14 = scalar_lea.hbm %s4853_s7, 32 }
 0x8f9   :  { %p4460_p11 = scmp.ne.s32.totalorder %s4853_s7, %s4459_s14  ;;  %p4463_p12 = scmp.lt.u32.totalorder %s4459_s14, %s4853_s7 }
 0x8fb   :  { %p4465_p13 = pnand %p4463_p12, %p4460_p11 }
 0x8fd   :  { %4468 = shalt.err (!%p4465_p13)
}
 0x8fe   :  { %3228 = dma.vmem_to_hbm [thread:$0]  %s3226_s4, 32, %s4853_s7, [#allocation4]  }
 0x8ff   :  { %4477 = dma.done.wait [#allocation4], 32  }
 0x900   :  { %4478 = vsyncadd [#allocation4], 4294967264 }
 0x901   :  { %3232 = vsyncpa [#allocation3], 1 }
 0x902   :  { %3233 = vsyncpa [#allocation6], 1 }
 0x903   :  { %3234 = vsyncpa [#allocation9], 1 }
 0x904   :  { %3235 = vsyncpa [#allocation12], 1 }
 0x905   :  { %3236 = vsyncpa [#allocation4], 1 }

</bundles_post_ra>
